<compile_context>
chip_gen: v6e
topology: v6e:2x2x1
jax: 0.10.0
libtpu: 0.0.40
codegen_flags: <defaults>
</compile_context>

<pallas_src>
import jax
import jax.numpy as jnp
from jax.experimental import pallas as pl
from jax.experimental.pallas import tpu as pltpu

D_IN = 28 * 28
HIDDEN_PAD = 128     # real hidden width 64, zero-padded to a full lane group
OUT_PAD = 128        # real #classes 10, padded to a lane-dense output slab
NUM_CLASSES = 10
NEG_INF = -1e9       # bias of padded (fake) logit columns


def mlp_kernel(x_ref, w1_ref, b1_ref, w2_ref, b2_ref,
               w3_ref, b3_ref, w4_ref, b4_ref, o_ref):
    x = x_ref[...]                                   # (tb, 784) compute dtype
    cdt = x.dtype

    # Layer 1: 784 -> 128(=64 real), f32 accumulate, ReLU, back to compute dtype
    h = jnp.dot(x, w1_ref[...], preferred_element_type=jnp.float32) + b1_ref[...]
    h = jnp.maximum(h, 0.0).astype(cdt)
    # Layer 2: 128 -> 128 (padded rows of w2 only ever see exact zeros)
    h = jnp.dot(h, w2_ref[...], preferred_element_type=jnp.float32) + b2_ref[...]
    h = jnp.maximum(h, 0.0).astype(cdt)
    # Layer 3: 128 -> 128
    h = jnp.dot(h, w3_ref[...], preferred_element_type=jnp.float32) + b3_ref[...]
    h = jnp.maximum(h, 0.0).astype(cdt)
    # Layer 4: 128 -> 128 logits (columns 10..127 carry a -1e9 bias)
    logits = jnp.dot(h, w4_ref[...], preferred_element_type=jnp.float32) + b4_ref[...]

    # Numerically stable log-softmax over the 128 lanes; the -1e9-biased
    # padded columns never win the max and exp() underflows to exactly 0,
    # so this equals log-softmax over the real 10 classes.
    m = jnp.max(logits, axis=-1, keepdims=True)
    shifted = logits - m
    lse = jnp.log(jnp.sum(jnp.exp(shifted), axis=-1, keepdims=True))
    o_ref[...] = shifted - lse                       # (tb, 128) f32, unmasked store


def prepare_params(params, compute_dtype=jnp.bfloat16):
    """Pad hidden 64->128 and logits 10->128; cast weights to compute_dtype.

    Zero-padded hidden channels stay exactly zero through ReLU, and the padded
    logit columns get a -1e9 bias so they drop out of the softmax normalizer.
    """
    def pad_to(a, shape):
        return jnp.pad(a, [(0, t - s) for s, t in zip(a.shape, shape)])

    w1 = pad_to(params["w1"], (D_IN, HIDDEN_PAD)).astype(compute_dtype)
    b1 = pad_to(params["b1"], (1, HIDDEN_PAD)).astype(jnp.float32)
    w2 = pad_to(params["w2"], (HIDDEN_PAD, HIDDEN_PAD)).astype(compute_dtype)
    b2 = pad_to(params["b2"], (1, HIDDEN_PAD)).astype(jnp.float32)
    w3 = pad_to(params["w3"], (HIDDEN_PAD, HIDDEN_PAD)).astype(compute_dtype)
    b3 = pad_to(params["b3"], (1, HIDDEN_PAD)).astype(jnp.float32)
    w4 = pad_to(params["w4"], (HIDDEN_PAD, OUT_PAD)).astype(compute_dtype)
    b4 = jnp.pad(params["b4"].astype(jnp.float32),
                 ((0, 0), (0, OUT_PAD - params["b4"].shape[-1])),
                 constant_values=NEG_INF)
    return (w1, b1, w2, b2, w3, b3, w4, b4)


def _round_up(n, m):
    return ((n + m - 1) // m) * m


def mnist_net_forward(x, padded_params, *, tb=256, compute_dtype=jnp.bfloat16):
    """x: (B, 784) float.  padded_params: output of prepare_params().

    Returns (B, 10) f32 log-probabilities.
    """
    w1, b1, w2, b2, w3, b3, w4, b4 = padded_params
    B, D = x.shape
    assert D == D_IN

    # Batch tile: as large as possible (<= tb), multiple of 8, and leave at
    # least 2 grid steps when B permits so v7x megacore sharding has work.
    tb_eff = max(8, min(tb, _round_up(max(B // 2, 1), 8)))
    Bp = _round_up(B, tb_eff)
    grid = (Bp // tb_eff,)

    # Cast activations once in the wrapper (halves x HBM traffic in bf16) and
    # zero-pad the batch to a multiple of the tile (padded rows sliced off).
    x = x.astype(compute_dtype)
    if Bp != B:
        x = jnp.pad(x, ((0, Bp - B), (0, 0)))

    # Grid-invariant BlockSpec for VMEM-resident weights / biases.
    def resident(a):
        return pl.BlockSpec(a.shape, lambda i: (0,) * a.ndim)

    itemsize = jnp.dtype(compute_dtype).itemsize
    weight_bytes = sum(int(a.size) * a.dtype.itemsize
                       for a in (w1, b1, w2, b2, w3, b3, w4, b4))
    cost = pl.CostEstimate(
        flops=2 * Bp * (D_IN * HIDDEN_PAD
                        + 2 * HIDDEN_PAD * HIDDEN_PAD
                        + HIDDEN_PAD * OUT_PAD),
        transcendentals=Bp * (OUT_PAD + 1),
        bytes_accessed=Bp * D_IN * itemsize + weight_bytes + Bp * OUT_PAD * 4,
    )

    out = pl.pallas_call(
        mlp_kernel,
        out_shape=jax.ShapeDtypeStruct((Bp, OUT_PAD), jnp.float32),
        grid=grid,
        in_specs=[
            pl.BlockSpec((tb_eff, D_IN), lambda i: (i, 0)),   # x tile over batch
            resident(w1), resident(b1),
            resident(w2), resident(b2),
            resident(w3), resident(b3),
            resident(w4), resident(b4),
        ],
        out_specs=pl.BlockSpec((tb_eff, OUT_PAD), lambda i: (i, 0)),
        compiler_params=pltpu.CompilerParams(
            dimension_semantics=("parallel",)),
        cost_estimate=cost,
    )(x, w1, b1, w2, b2, w3, b3, w4, b4)

    return out[:B, :NUM_CLASSES]


def init_params(key):
    """nn.Linear-style init; weights stored transposed as (in, out)."""
    dims = [(D_IN, 64), (64, 64), (64, 64), (64, NUM_CLASSES)]
    params = {}
    for idx, (din, dout) in enumerate(dims, start=1):
        key, kw, kb = jax.random.split(key, 3)
        bound = 1.0 / jnp.sqrt(din)
        params[f"w{idx}"] = jax.random.uniform(
            kw, (din, dout), jnp.float32, -bound, bound)
        params[f"b{idx}"] = jax.random.uniform(
            kb, (1, dout), jnp.float32, -bound, bound)
    return params


def reference_forward_mixed(x, params, compute_dtype=jnp.bfloat16):
    """Pure-JAX reference mirroring the kernel's bf16-matmul / f32-accum math."""
    h = x.astype(compute_dtype)
    for i in (1, 2, 3):
        h = jnp.dot(h, params[f"w{i}"].astype(compute_dtype),
                    preferred_element_type=jnp.float32) + params[f"b{i}"]
        h = jnp.maximum(h, 0.0).astype(compute_dtype)
    logits = jnp.dot(h, params["w4"].astype(compute_dtype),
                     preferred_element_type=jnp.float32) + params["b4"]
    return jax.nn.log_softmax(logits, axis=1)


def reference_forward_f32(x, params):
    h = x
    for i in (1, 2, 3):
        h = jnp.maximum(h @ params[f"w{i}"] + params[f"b{i}"], 0.0)
    logits = h @ params["w4"] + params["b4"]
    return jax.nn.log_softmax(logits, axis=1)


if __name__ == "__main__":
    key = jax.random.PRNGKey(0)
    key, kx = jax.random.split(key)
    params = init_params(key)
    padded = prepare_params(params, compute_dtype=jnp.bfloat16)

    # Main check: multi-tile grid (B=256 -> tile 128, 2 parallel grid steps).
    B = 256
    x = jax.random.normal(kx, (B, D_IN), jnp.float32)
    out = jax.block_until_ready(mnist_net_forward(x, padded))
    assert out.shape == (B, NUM_CLASSES)
    assert bool(jnp.all(jnp.isfinite(out)))

    ref_mixed = reference_forward_mixed(x, params)
    ref_f32 = reference_forward_f32(x, params)
    assert jnp.allclose(out, ref_mixed, atol=1e-3, rtol=1e-3)   # same-precision ref
    assert jnp.allclose(out, ref_f32, atol=5e-2, rtol=5e-2)     # bf16 vs f32 sanity
    assert jnp.allclose(jnp.exp(out).sum(axis=1), 1.0, atol=1e-4)

    # Ragged-batch path (batch padded to a tile multiple inside the wrapper).
    key, kx2 = jax.random.split(key)
    x2 = jax.random.normal(kx2, (40, D_IN), jnp.float32)
    out2 = jax.block_until_ready(mnist_net_forward(x2, padded))
    assert out2.shape == (40, NUM_CLASSES)
    assert jnp.allclose(out2, reference_forward_mixed(x2, params),
                        atol=1e-3, rtol=1e-3)

    print("KERNEL_OK")
</pallas_src>

<mosaic_0001>
module attributes {stable_mosaic.version = 11 : i64} {
  func.func @mlp_kernel(%arg0: i32, %arg1: memref<128x784xbf16, #tpu.memory_space<vmem>>, %arg2: memref<784x128xbf16, #tpu.memory_space<vmem>>, %arg3: memref<1x128xf32, #tpu.memory_space<vmem>>, %arg4: memref<128x128xbf16, #tpu.memory_space<vmem>>, %arg5: memref<1x128xf32, #tpu.memory_space<vmem>>, %arg6: memref<128x128xbf16, #tpu.memory_space<vmem>>, %arg7: memref<1x128xf32, #tpu.memory_space<vmem>>, %arg8: memref<128x128xbf16, #tpu.memory_space<vmem>>, %arg9: memref<1x128xf32, #tpu.memory_space<vmem>>, %arg10: memref<128x128xf32, #tpu.memory_space<vmem>>) attributes {dimension_semantics = [#tpu.dimension_semantics<parallel>], iteration_bounds = array<i64: 2>, scalar_prefetch = 0 : i64, scratch_operands = 0 : i64, tpu.core_type = #tpu.core_type<tc>, window_params = [{transform_indices = @transform_0, window_bounds = array<i64: 128, 784>}, {pipeline_mode = #tpu.pipeline_mode<synchronous>, transform_indices = @transform_1, window_bounds = array<i64: 784, 128>}, {pipeline_mode = #tpu.pipeline_mode<synchronous>, transform_indices = @transform_2, window_bounds = array<i64: 1, 128>}, {pipeline_mode = #tpu.pipeline_mode<synchronous>, transform_indices = @transform_3, window_bounds = array<i64: 128, 128>}, {pipeline_mode = #tpu.pipeline_mode<synchronous>, transform_indices = @transform_4, window_bounds = array<i64: 1, 128>}, {pipeline_mode = #tpu.pipeline_mode<synchronous>, transform_indices = @transform_5, window_bounds = array<i64: 128, 128>}, {pipeline_mode = #tpu.pipeline_mode<synchronous>, transform_indices = @transform_6, window_bounds = array<i64: 1, 128>}, {pipeline_mode = #tpu.pipeline_mode<synchronous>, transform_indices = @transform_7, window_bounds = array<i64: 128, 128>}, {pipeline_mode = #tpu.pipeline_mode<synchronous>, transform_indices = @transform_8, window_bounds = array<i64: 1, 128>}, {transform_indices = @transform_9, window_bounds = array<i64: 128, 128>}]} {
    %c0 = arith.constant 0 : index
    %c0_0 = arith.constant 0 : index
    %0 = vector.load %arg1[%c0, %c0_0] : memref<128x784xbf16, #tpu.memory_space<vmem>>, vector<128x784xbf16>
    %c0_1 = arith.constant 0 : index
    %c0_2 = arith.constant 0 : index
    %1 = vector.load %arg2[%c0_1, %c0_2] : memref<784x128xbf16, #tpu.memory_space<vmem>>, vector<784x128xbf16>
    %cst = arith.constant dense<0.000000e+00> : vector<128x128xf32>
    %2 = tpu.matmul %0, %1, %cst {dimension_numbers = #tpu.dot_dimension_numbers<[1], [0], [0], [1], [0, 0, 1, 1], [], []>} : vector<128x784xbf16>, vector<784x128xbf16>, vector<128x128xf32> -> vector<128x128xf32>
    %c0_3 = arith.constant 0 : index
    %c0_4 = arith.constant 0 : index
    %3 = vector.load %arg3[%c0_3, %c0_4] : memref<1x128xf32, #tpu.memory_space<vmem>>, vector<1x128xf32>
    %4 = vector.broadcast %3 : vector<1x128xf32> to vector<128x128xf32>
    %5 = arith.addf %2, %4 : vector<128x128xf32>
    %cst_5 = arith.constant 0.000000e+00 : f32
    %6 = vector.broadcast %cst_5 : f32 to vector<128x128xf32>
    %7 = arith.maximumf %5, %6 : vector<128x128xf32>
    %8 = arith.truncf %7 : vector<128x128xf32> to vector<128x128xbf16>
    %c0_6 = arith.constant 0 : index
    %c0_7 = arith.constant 0 : index
    %9 = vector.load %arg4[%c0_6, %c0_7] : memref<128x128xbf16, #tpu.memory_space<vmem>>, vector<128x128xbf16>
    %cst_8 = arith.constant dense<0.000000e+00> : vector<128x128xf32>
    %10 = tpu.matmul %8, %9, %cst_8 {dimension_numbers = #tpu.dot_dimension_numbers<[1], [0], [0], [1], [0, 0, 1, 1], [], []>} : vector<128x128xbf16>, vector<128x128xbf16>, vector<128x128xf32> -> vector<128x128xf32>
    %c0_9 = arith.constant 0 : index
    %c0_10 = arith.constant 0 : index
    %11 = vector.load %arg5[%c0_9, %c0_10] : memref<1x128xf32, #tpu.memory_space<vmem>>, vector<1x128xf32>
    %12 = vector.broadcast %11 : vector<1x128xf32> to vector<128x128xf32>
    %13 = arith.addf %10, %12 : vector<128x128xf32>
    %cst_11 = arith.constant 0.000000e+00 : f32
    %14 = vector.broadcast %cst_11 : f32 to vector<128x128xf32>
    %15 = arith.maximumf %13, %14 : vector<128x128xf32>
    %16 = arith.truncf %15 : vector<128x128xf32> to vector<128x128xbf16>
    %c0_12 = arith.constant 0 : index
    %c0_13 = arith.constant 0 : index
    %17 = vector.load %arg6[%c0_12, %c0_13] : memref<128x128xbf16, #tpu.memory_space<vmem>>, vector<128x128xbf16>
    %cst_14 = arith.constant dense<0.000000e+00> : vector<128x128xf32>
    %18 = tpu.matmul %16, %17, %cst_14 {dimension_numbers = #tpu.dot_dimension_numbers<[1], [0], [0], [1], [0, 0, 1, 1], [], []>} : vector<128x128xbf16>, vector<128x128xbf16>, vector<128x128xf32> -> vector<128x128xf32>
    %c0_15 = arith.constant 0 : index
    %c0_16 = arith.constant 0 : index
    %19 = vector.load %arg7[%c0_15, %c0_16] : memref<1x128xf32, #tpu.memory_space<vmem>>, vector<1x128xf32>
    %20 = vector.broadcast %19 : vector<1x128xf32> to vector<128x128xf32>
    %21 = arith.addf %18, %20 : vector<128x128xf32>
    %cst_17 = arith.constant 0.000000e+00 : f32
    %22 = vector.broadcast %cst_17 : f32 to vector<128x128xf32>
    %23 = arith.maximumf %21, %22 : vector<128x128xf32>
    %24 = arith.truncf %23 : vector<128x128xf32> to vector<128x128xbf16>
    %c0_18 = arith.constant 0 : index
    %c0_19 = arith.constant 0 : index
    %25 = vector.load %arg8[%c0_18, %c0_19] : memref<128x128xbf16, #tpu.memory_space<vmem>>, vector<128x128xbf16>
    %cst_20 = arith.constant dense<0.000000e+00> : vector<128x128xf32>
    %26 = tpu.matmul %24, %25, %cst_20 {dimension_numbers = #tpu.dot_dimension_numbers<[1], [0], [0], [1], [0, 0, 1, 1], [], []>} : vector<128x128xbf16>, vector<128x128xbf16>, vector<128x128xf32> -> vector<128x128xf32>
    %c0_21 = arith.constant 0 : index
    %c0_22 = arith.constant 0 : index
    %27 = vector.load %arg9[%c0_21, %c0_22] : memref<1x128xf32, #tpu.memory_space<vmem>>, vector<1x128xf32>
    %28 = vector.broadcast %27 : vector<1x128xf32> to vector<128x128xf32>
    %29 = arith.addf %26, %28 : vector<128x128xf32>
    %cst_23 = arith.constant dense<0xFF800000> : vector<128xf32>
    %30 = vector.multi_reduction <maximumf>, %29, %cst_23 [1] : vector<128x128xf32> to vector<128xf32>
    %31 = vector.shape_cast %30 : vector<128xf32> to vector<128x1xf32>
    %32 = vector.broadcast %31 : vector<128x1xf32> to vector<128x128xf32>
    %33 = arith.subf %29, %32 : vector<128x128xf32>
    %34 = math.exp %33 : vector<128x128xf32>
    %cst_24 = arith.constant dense<0.000000e+00> : vector<128xf32>
    %35 = vector.multi_reduction <add>, %34, %cst_24 [1] : vector<128x128xf32> to vector<128xf32>
    %36 = vector.shape_cast %35 : vector<128xf32> to vector<128x1xf32>
    %37 = math.log %36 : vector<128x1xf32>
    %38 = vector.broadcast %37 : vector<128x1xf32> to vector<128x128xf32>
    %39 = arith.subf %33, %38 : vector<128x128xf32>
    %c0_25 = arith.constant 0 : index
    %c0_26 = arith.constant 0 : index
    %40 = vector.load %arg10[%c0_25, %c0_26] : memref<128x128xf32, #tpu.memory_space<vmem>>, vector<128x128xf32>
    tpu.vector_store %arg10[%c0_25, %c0_26], %39 {strides = array<i32>} : memref<128x128xf32, #tpu.memory_space<vmem>>, vector<128x128xf32>,
    return
  }
  func.func @transform_0(%arg0: i32) -> (i32, i32) {
    %c0_i32 = arith.constant 0 : i32
    %c0_i32_0 = arith.constant 0 : i32
    return %arg0, %c0_i32 : i32, i32
  }
  func.func @transform_1(%arg0: i32) -> (i32, i32) {
    %c0_i32 = arith.constant 0 : i32
    %c0_i32_0 = arith.constant 0 : i32
    %c0_i32_1 = arith.constant 0 : i32
    return %c0_i32, %c0_i32_0 : i32, i32
  }
  func.func @transform_2(%arg0: i32) -> (i32, i32) {
    %c0_i32 = arith.constant 0 : i32
    %c0_i32_0 = arith.constant 0 : i32
    %c0_i32_1 = arith.constant 0 : i32
    return %c0_i32, %c0_i32_0 : i32, i32
  }
  func.func @transform_3(%arg0: i32) -> (i32, i32) {
    %c0_i32 = arith.constant 0 : i32
    %c0_i32_0 = arith.constant 0 : i32
    %c0_i32_1 = arith.constant 0 : i32
    return %c0_i32, %c0_i32_0 : i32, i32
  }
  func.func @transform_4(%arg0: i32) -> (i32, i32) {
    %c0_i32 = arith.constant 0 : i32
    %c0_i32_0 = arith.constant 0 : i32
    %c0_i32_1 = arith.constant 0 : i32
    return %c0_i32, %c0_i32_0 : i32, i32
  }
  func.func @transform_5(%arg0: i32) -> (i32, i32) {
    %c0_i32 = arith.constant 0 : i32
    %c0_i32_0 = arith.constant 0 : i32
    %c0_i32_1 = arith.constant 0 : i32
    return %c0_i32, %c0_i32_0 : i32, i32
  }
  func.func @transform_6(%arg0: i32) -> (i32, i32) {
    %c0_i32 = arith.constant 0 : i32
    %c0_i32_0 = arith.constant 0 : i32
    %c0_i32_1 = arith.constant 0 : i32
    return %c0_i32, %c0_i32_0 : i32, i32
  }
  func.func @transform_7(%arg0: i32) -> (i32, i32) {
    %c0_i32 = arith.constant 0 : i32
    %c0_i32_0 = arith.constant 0 : i32
    %c0_i32_1 = arith.constant 0 : i32
    return %c0_i32, %c0_i32_0 : i32, i32
  }
  func.func @transform_8(%arg0: i32) -> (i32, i32) {
    %c0_i32 = arith.constant 0 : i32
    %c0_i32_0 = arith.constant 0 : i32
    %c0_i32_1 = arith.constant 0 : i32
    return %c0_i32, %c0_i32_0 : i32, i32
  }
  func.func @transform_9(%arg0: i32) -> (i32, i32) {
    %c0_i32 = arith.constant 0 : i32
    %c0_i32_0 = arith.constant 0 : i32
    return %arg0, %c0_i32 : i32, i32
  }
}

</mosaic_0001>

<bundles_post_ra>
// kernel: tpu_custom_call.1
= control target key start
LH: loop header
LB: loop body
LE: loop exit
PB: predicated region body
PF: predicated region fallthrough
CT: control target
= control target key end

     0   :  { %14 = vsyncpa [#allocation3], 0  ;;  %s3868_s0 = inlined_call_operand.vmem [shape: bf16[256,784], index: 0, kind: input, shape index: {}]   ;;  %s3869_s1 = inlined_call_operand.vmem [shape: bf16[784,128], index: 1, kind: input, shape index: {}]   ;;  %s3870_s2 = inlined_call_operand.vmem [shape: f32[1,128], index: 2, kind: input, shape index: {}]   ;;  %s3871_s3 = inlined_call_operand.vmem [shape: bf16[128,128], index: 3, kind: input, shape index: {}]   ;;  %s3872_s4 = inlined_call_operand.vmem [shape: f32[1,128], index: 4, kind: input, shape index: {}]   ;;  %s3873_s5 = inlined_call_operand.vmem [shape: bf16[128,128], index: 5, kind: input, shape index: {}]   ;;  %s3874_s6 = inlined_call_operand.vmem [shape: f32[1,128], index: 6, kind: input, shape index: {}]   ;;  %s3875_s7 = inlined_call_operand.vmem [shape: bf16[128,128], index: 7, kind: input, shape index: {}]   ;;  %s3876_s8 = inlined_call_operand.vmem [shape: f32[1,128], index: 8, kind: input, shape index: {}]   ;;  %s3877_s9 = inlined_call_operand.hbm [shape: f32[256,128], index: 9, kind: output, shape index: {}]  }
   0x1   :  { %16 = vsyncpa [#allocation3 + $0x1], 0  ;;  %s3213_s30 = smov 0   ;;  %s3215_s10 = smov 0  }
   0x2   :  { %s3217_s11 = smov 0   ;;  %s3219_s12 = smov 0  }
   0x3 LB: > { %s3234_s13 = sadd.s32 4294967295, %s3158_s12   ;;  %s2322_s14 = sadd.s32 4294967294, %s3158_s12   ;;  %s3158_s12 = sphi %s3219_s12, %s3883_s12   ;;  %s3154_s11 = sphi %s3217_s11, %s3882_s11   ;;  %s3150_s10 = sphi %s3215_s10, %s3881_s10   ;;  %s3146_s30 = sphi %s3213_s30, %s3880_s30  }
   0x4   : > { %s3238_s15 = sadd.s32 1, %s3158_s12   ;;  %s223_s16 = sadd.s32 1, %s3154_s11 }
   0x5   : > { %s220_s17 = ssub.s32 %s3158_s12, %s3238_s15  ;;  %p233_p0 = scmp.ne.s32.totalorder %s3154_s11, %s3150_s10 }
   0x6   : > { %p221_p1 = scmp.eq.s32.totalorder %s220_s17, 0  ;;  %p234_p2 = scmp.eq.s32.totalorder %s3234_s13, 1 }
   0x7   : > { %p239_p3 = scmp.ne.s32.totalorder %s3150_s10, %s3146_s30  ;;  %p240_p4 = scmp.eq.s32.totalorder %s2322_s14, 1 }
   0x8   : > { %s3249_s18 = scalar_select %p221_p1, %s3154_s11, %s223_s16  }
   0x9   : > { %p3251_p5 = por %p234_p2, %p233_p0  ;;  %p3255_p6 = por %p240_p4, %p239_p3 }
   0xa   : > { %p2325_p7 = scmp.ge.s32.totalorder %s3158_s12, 1  ;;  %p292_p8 = scmp.lt.s32.totalorder %s3158_s12, 3 }
   0xc   : > { %p293_p9 = pnand %p2325_p7, %p292_p8 }
   0xd   : > { %s2327_s25 = sshll.u32 (!%p293_p9), %s3234_s13, 4  ;;  %s326_s14 = sand.u32 (!%p293_p9), 1, %s3150_s10  }
   0xe   : > { %296 = sbr.rel (%p293_p9) target bundleno = 1324 (0x52c), region = 56  ;;  %p330_p10 = scmp.lt.s32.totalorder (!%p293_p9), %s2327_s25, 31 }
   0xf   : > { %s2475_s17 = sshll.u32 (!%p293_p9), %s3234_s13, 11  ;;  %s3828_s13 = scalar_lea.sflag (!%p293_p9), [#allocation3], %s326_s14 }
  0x10   : > { %s3820_s23 = scalar_lea.hbm (!%p293_p9), %s3877_s9, %s2475_s17  ;;  %s3160_s28 = smov (!%p293_p9), [#allocation2]  }
  0x13   : > { %v2881_v0 = vld [vmem:[%s3869_s1 + $0x78] sm:$0xff]   ;;  %v2885_v4 = vld [vmem:[%s3869_s1 + $0x70] sm:$0xff]   ;;  %v2889_v8 = vld [vmem:[%s3869_s1 + $0x68] sm:$0xff]   ;;  %s3885_s25 = smov (!%p330_p10, %s2327_s25), 31  ;;  %vm1081_vm0 = vcmask 130048  }
  0x14   : > { %v2882_v1 = vld [vmem:[%s3869_s1 + $0x38] sm:$0xff]   ;;  %2476 = vmatprep.subr.bf16.mxu0 %v2881_v0  ;;  %v2886_v5 = vld [vmem:[%s3869_s1 + $0x30] sm:$0xff]   ;;  %v2890_v9 = vld [vmem:[%s3869_s1 + $0x28] sm:$0xff]   ;;  %s2839_s26 = smul.u32 28, %s3885_s25 }
  0x15   : > { %v2883_v2 = vld [vmem:[%s3869_s1 + $0xf8] sm:$0xff]   ;;  %2477 = vmatpush3.bf16.msra.mxu0 %v2882_v1  ;;  %v2887_v6 = vld [vmem:[%s3869_s1 + $0xf0] sm:$0xff]   ;;  %v2891_v10 = vld [vmem:[%s3869_s1 + $0xe8] sm:$0xff]  }
  0x16   : > { %v2884_v3 = vld [vmem:[%s3869_s1 + $0xb8] sm:$0xff]   ;;  %2540 = vmatprep.subr.bf16.mxu1 %v2883_v2  ;;  %2478 = vmatprep.subr.bf16.mxu0 %v2885_v4  ;;  %v2888_v7 = vld [vmem:[%s3869_s1 + $0xb0] sm:$0xff]   ;;  %v2892_v11 = vld [vmem:[%s3869_s1 + $0xa8] sm:$0xff]   ;;  %s3352_s24 = scalar_lea.vmem %s3868_s0, %s2839_s26  ;;  %s2326_s26 = sshll.u32 %s326_s14, 7 }
  0x17   : > { %2541 = vmatpush3.bf16.msra.mxu1 %v2884_v3  ;;  %v2893_v12 = vld [vmem:[%s3869_s1 + $0x60] sm:$0xff]   ;;  %v2897_v16 = vld [vmem:[%s3869_s1 + $0x58] sm:$0xff]   ;;  %v2901_v20 = vld [vmem:[%s3869_s1 + $0x50] sm:$0xff]   ;;  %s3784_s16 = scalar_lea.vmem [#allocation2], %s2326_s26 }
  0x18   : > { %2542 = vmatprep.subr.bf16.mxu1 %v2887_v6  ;;  %v2894_v13 = vld [vmem:[%s3869_s1 + $0x20] sm:$0xff]   ;;  %v2898_v17 = vld [vmem:[%s3869_s1 + $0x18] sm:$0xff]   ;;  %v2902_v21 = vld [vmem:[%s3869_s1 + $0x10] sm:$0xff]   ;;  %s2260_s21 = sshll.u32 %s3784_s16, 4  ;;  %s3822_s21 = int_to_ptr.vmem [resolvable:$true] %s2260_s21 }
  0x19   : > { %2479 = vmatpush3.bf16.msra.mxu0 %v2886_v5  ;;  %v2895_v14 = vld [vmem:[%s3869_s1 + $0xe0] sm:$0xff]   ;;  %v2899_v18 = vld [vmem:[%s3869_s1 + $0xd8] sm:$0xff]   ;;  %v2903_v22 = vld [vmem:[%s3869_s1 + $0xd0] sm:$0xff]   ;;  %s3098_s27 = scalar_lea.vmem %s3822_s21, 2048 }
  0x1a   : > { %2480 = vmatprep.subr.bf16.mxu0 %v2889_v8  ;;  %v2896_v15 = vld [vmem:[%s3869_s1 + $0xa0] sm:$0xff]   ;;  %v2900_v19 = vld [vmem:[%s3869_s1 + $0x98] sm:$0xff]   ;;  %v2904_v23 = vld [vmem:[%s3869_s1 + $0x90] sm:$0xff]   ;;  %p3099_p11 = scmp.ne.s32.totalorder %s3822_s21, %s3098_s27 }
  0x1b   : > { %2543 = vmatpush3.bf16.msra.mxu1 %v2888_v7  ;;  %v2905_v24 = vld [vmem:[%s3869_s1 + $0x48] sm:$0xff]   ;;  %v2909_v28 = vld [vmem:[%s3869_s1 + $0x40] sm:$0xff]   ;;  %v2916_v34 = vld [vmem:[%s3869_s1 + $0x178] sm:$0xff]  }
  0x1c   : > { %2544 = vmatprep.subr.bf16.mxu1 %v2891_v10  ;;  %v2906_v25 = vld [vmem:[%s3869_s1 + $0x8] sm:$0xff]   ;;  %v2910_v29 = vld [vmem:[%s3869_s1] sm:$0xff]   ;;  %v2920_v37 = vld [vmem:[%s3869_s1 + $0x138] sm:$0xff]   ;;  %p3100_p12 = pnand %p3099_p11, %p3251_p5 }
  0x1d   : > { %2481 = vmatpush3.bf16.msra.mxu0 %v2890_v9  ;;  %v2907_v26 = vld [vmem:[%s3869_s1 + $0xc8] sm:$0xff]   ;;  %v2911_v30 = vld [vmem:[%s3869_s1 + $0xc0] sm:$0xff]   ;;  %v2921_v38 = vld [vmem:[%s3352_s24 + $0x3c] ss:$28 sps:$4 sm:$0xff]  }
  0x1e   : > { %2482 = vmatprep.subr.bf16.mxu0 %v2893_v12  ;;  %v2908_v27 = vld [vmem:[%s3869_s1 + $0x88] sm:$0xff]   ;;  %v2912_v31 = vld [vmem:[%s3352_s24] ss:$28 sps:$4 sm:$0xff]   ;;  %v2923_v39 = vld [vmem:[%s3352_s24 + $0x38] ss:$28 sps:$4 sm:$0xff]   ;;  %p3101_p13 = pneg %p3100_p12 }
  0x1f   : > { %2545 = vmatpush3.bf16.msra.mxu1 %v2892_v11  ;;  %v2914_v32 = vld [vmem:[%s3352_s24 + $0x4] ss:$28 sps:$4 sm:$0xff]   ;;  %v2919_v36 = vld [vmem:[%s3352_s24 + $0xc] ss:$28 sps:$4 sm:$0xff]   ;;  %v2924_v40 = vld [vmem:[%s3869_s1 + $0x170] sm:$0xff]  }
  0x20   : > { %2546 = vmatprep.subr.bf16.mxu1 %v2895_v14  ;;  %v2915_v33 = vld [vmem:[%s3869_s1 + $0x80] sm:$0xff]   ;;  %1138 = vmatprep.mubr.bf16.mxu0 %v2914_v32  ;;  %v2927_v42 = vld [vmem:[%s3869_s1 + $0x130] sm:$0xff]   ;;  %v2932_v45 = vld [vmem:[%s3869_s1 + $0x168] sm:$0xff]  }
  0x21   : > { %2483 = vmatpush3.bf16.msra.mxu0 %v2894_v13  ;;  %v2917_v35 = vld [vmem:[%s3352_s24 + $0x8] ss:$28 sps:$4 sm:$0xff]   ;;  %1235 = vmatprep.mubr.bf16.mxu1 %v2919_v36  ;;  %v2928_v43 = vld [vmem:[%s3352_s24 + $0x40] ss:$28 sps:$4 sm:$0xff]   ;;  %v2929_v44 = vld [vmem:[%s3352_s24 + $0x74] ss:$28 sps:$4 sm:$0xff]  }
  0x22   : > { %2484 = vmatprep.subr.bf16.mxu0 %v2897_v16  ;;  %v2925_v41 = vld [vmem:[%s3352_s24 + $0x44] ss:$28 sps:$4 sm:$0xff]   ;;  %v2933_v46 = vld [vmem:[%s3352_s24 + $0x7c] ss:$28 sps:$4 sm:$0xff]   ;;  %v2935_v47 = vld [vmem:[%s3869_s1 + $0x128] sm:$0xff]  }
  0x23   : > { %2547 = vmatpush3.bf16.msra.mxu1 %v2896_v15  ;;  %v2931_v48 = vld [vmem:[%s3352_s24 + $0x70] ss:$28 sps:$4 sm:$0xff]   ;;  %v2940_v50 = vld [vmem:[%s3869_s1 + $0x160] sm:$0xff]   ;;  %v2936_v51 = vld [vmem:[%s3352_s24 + $0x78] ss:$28 sps:$4 sm:$0xff]  }
  0x24   : > { %2548 = vmatprep.subr.bf16.mxu1 %v2899_v18  ;;  %v2937_v49 = vld [vmem:[%s3352_s24 + $0xac] ss:$28 sps:$4 sm:$0xff]   ;;  %v2943_v52 = vld [vmem:[%s3869_s1 + $0x120] sm:$0xff]   ;;  %v2941_v53 = vld [vmem:[%s3352_s24 + $0xb4] ss:$28 sps:$4 sm:$0xff]  }
  0x25   : > { %2485 = vmatpush3.bf16.msra.mxu0 %v2898_v17  ;;  %v2948_v54 = vld [vmem:[%s3869_s1 + $0x158] sm:$0xff]   ;;  %v2939_v55 = vld [vmem:[%s3352_s24 + $0xa8] ss:$28 sps:$4 sm:$0xff]   ;;  %v2944_v59 = vld [vmem:[%s3352_s24 + $0xb0] ss:$28 sps:$4 sm:$0xff]  }
  0x26   : > { %2486 = vmatprep.subr.bf16.mxu0 %v2901_v20  ;;  %v2951_v56 = vld [vmem:[%s3869_s1 + $0x118] sm:$0xff]   ;;  %v2945_v57 = vld [vmem:[%s3352_s24 + $0xe4] ss:$28 sps:$4 sm:$0xff]   ;;  %v2957_v60 = vld [vmem:[%s3869_s1 + $0x150] sm:$0xff]  }
  0x27   : > { %2549 = vmatpush3.bf16.msra.mxu1 %v2900_v19  ;;  %v2953_v58 = vld [vmem:[%s3869_s1 + $0x180] sm:$0xff]   ;;  %v2949_v61 = vld [vmem:[%s3352_s24 + $0xec] ss:$28 sps:$4 sm:$0xff]   ;;  %v2960_v62 = vld [vmem:[%s3869_s1 + $0x110] sm:$0xff]  }
  0x28   : > { %2550 = vmatprep.subr.bf16.mxu1 %v2903_v22  ;;  %v2947_v63 = vld [vmem:[%s3352_s24 + $0xe0] ss:$28 sps:$4 sm:$0xff]   ;;  %v2965_v0 = vld [vmem:[%s3869_s1 + $0x148] sm:$0xff]   ;;  %v2956_v7 = vld [vmem:[%s3352_s24 + $0x118] ss:$28 sps:$4 sm:$0xff]  }
  0x29   : > { %2487 = vmatpush3.bf16.msra.mxu0 %v2902_v21  ;;  %v2954_v1 = vld [vmem:[%s3352_s24 + $0x11c] ss:$28 sps:$4 sm:$0xff]   ;;  %v2968_v2 = vld [vmem:[%s3869_s1 + $0x108] sm:$0xff]   ;;  %v2958_v4 = vld [vmem:[%s3352_s24 + $0x124] ss:$28 sps:$4 sm:$0xff]  }
  0x2a   : > { %2488 = vmatprep.subr.bf16.mxu0 %v2905_v24  ;;  %v2952_v3 = vld [vmem:[%s3352_s24 + $0xe8] ss:$28 sps:$4 sm:$0xff]   ;;  %v2962_v8 = vld [vmem:[%s3352_s24 + $0x154] ss:$28 sps:$4 sm:$0xff]   ;;  %v2961_v9 = vld [vmem:[%s3352_s24 + $0x120] ss:$28 sps:$4 sm:$0xff]  }
  0x2b   : > { %2551 = vmatpush3.bf16.msra.mxu1 %v2904_v23  ;;  %v2973_v5 = vld [vmem:[%s3869_s1 + $0x140] sm:$0xff]   ;;  %v2966_v10 = vld [vmem:[%s3352_s24 + $0x15c] ss:$28 sps:$4 sm:$0xff]   ;;  %v2964_v11 = vld [vmem:[%s3352_s24 + $0x150] ss:$28 sps:$4 sm:$0xff]  }
  0x2c   : > { %2552 = vmatprep.subr.bf16.mxu1 %v2907_v26  ;;  %v2976_v6 = vld [vmem:[%s3869_s1 + $0x100] sm:$0xff]   ;;  %v2970_v12 = vld [vmem:[%s3352_s24 + $0x18c] ss:$28 sps:$4 sm:$0xff]   ;;  %v2969_v13 = vld [vmem:[%s3352_s24 + $0x158] ss:$28 sps:$4 sm:$0xff]  }
  0x2d   : > { %2489 = vmatpush3.bf16.msra.mxu0 %v2906_v25  ;;  %v2974_v14 = vld [vmem:[%s3352_s24 + $0x194] ss:$28 sps:$4 sm:$0xff]   ;;  %v2972_v15 = vld [vmem:[%s3352_s24 + $0x188] ss:$28 sps:$4 sm:$0xff]   ;;  %v2990_v25 = vld [vmem:[%s3352_s24 + $0xc0] ss:$28 sps:$4 sm:$0xff]  }
  0x2e   : > { %2490 = vmatprep.subr.bf16.mxu0 %v2909_v28  ;;  %v2977_v16 = vld [vmem:[%s3352_s24 + $0x190] ss:$28 sps:$4 sm:$0xff]   ;;  %v2981_v18 = vld [vmem:[%s3352_s24 + $0x18] ss:$28 sps:$4 sm:$0xff]   ;;  %v2989_v22 = vld [vmem:[%s3352_s24 + $0x88] ss:$28 sps:$4 sm:$0xff]  }
  0x2f   : > { %2553 = vmatpush3.bf16.msra.mxu1 %v2908_v27  ;;  %v2980_v17 = vld [vmem:[%s3352_s24 + $0x14] ss:$28 sps:$4 sm:$0xff]   ;;  %v2983_v20 = vld [vmem:[%s3352_s24 + $0x4c] ss:$28 sps:$4 sm:$0xff]   ;;  %v2986_v24 = vld [vmem:[%s3352_s24 + $0x84] ss:$28 sps:$4 sm:$0xff]  }
  0x30   : > { %2554 = vmatprep.subr.bf16.mxu1 %v2911_v30  ;;  %v2978_v19 = vld [vmem:[%s3352_s24 + $0x10] ss:$28 sps:$4 sm:$0xff]   ;;  %v2985_v23 = vld [vmem:[%s3352_s24 + $0x48] ss:$28 sps:$4 sm:$0xff]   ;;  %v2997_v26 = vld [vmem:[%s3352_s24 + $0xf8] ss:$28 sps:$4 sm:$0xff]  }
  0x31   : > { %2491 = vmatpush3.bf16.msra.mxu0 %v2910_v29  ;;  %v2982_v21 = vld [vmem:[%s3352_s24 + $0x50] ss:$28 sps:$4 sm:$0xff]   ;;  %v2988_v27 = vld [vmem:[%s3352_s24 + $0x80] ss:$28 sps:$4 sm:$0xff]   ;;  %v3005_v30 = vld [vmem:[%s3352_s24 + $0x168] ss:$28 sps:$4 sm:$0xff]  }
  0x32   : > { %2604 = vmatprep.subr.bf16.mxu0 %v2916_v34  ;;  %v2991_v28 = vld [vmem:[%s3352_s24 + $0xbc] ss:$28 sps:$4 sm:$0xff]   ;;  %v2998_v29 = vld [vmem:[%s3352_s24 + $0x130] ss:$28 sps:$4 sm:$0xff]   ;;  %v3001_v36 = vld [vmem:[%s3352_s24 + $0x128] ss:$28 sps:$4 sm:$0xff]  }
  0x33   : > { %2555 = vmatpush3.bf16.msra.mxu1 %v2915_v33  ;;  %v2994_v32 = vld [vmem:[%s3352_s24 + $0xf4] ss:$28 sps:$4 sm:$0xff]   ;;  %v3006_v33 = vld [vmem:[%s3352_s24 + $0x1a0] ss:$28 sps:$4 sm:$0xff]  }
  0x34   : > { %1139 = vmatmul.mubr.bf16.vlgmr.msra.gmra.mxu0 %v2912_v31  ;;  %2725 = vmatprep.subr.bf16.mxu1 %v2953_v58  ;;  %v2993_v31 = vld [vmem:[%s3352_s24 + $0xb8] ss:$28 sps:$4 sm:$0xff]   ;;  %v2996_v34 = vld [vmem:[%s3352_s24 + $0xf0] ss:$28 sps:$4 sm:$0xff]  }
  0x35   : > { %2605 = vmatpush3.bf16.msra.mxu0 %v2920_v37  ;;  %1146 = vmatprep.mubr.bf16.mxu0 %v2921_v38  ;;  %v3002_v37 = vld [vmem:[%s3352_s24 + $0x164] ss:$28 sps:$4 sm:$0xff]  }
  0x36   : > { %1236 = vmatmul.mubr.bf16.vlgmr.msra.gmra.mxu1 %v2917_v35  ;;  %2606 = vmatprep.subr.bf16.mxu0 %v2924_v40  ;;  %v2999_v35 = vld [vmem:[%s3352_s24 + $0x12c] ss:$28 sps:$4 sm:$0xff]   ;;  %v3004_v38 = vld [vmem:[%s3352_s24 + $0x160] ss:$28 sps:$4 sm:$0xff]   ;;  %v3009_v40 = vld [vmem:[%s3352_s24 + $0x198] ss:$28 sps:$4 sm:$0xff]  }
  0x37   : > { %1243 = vmatprep.mubr.bf16.mxu1 %v2925_v41  ;;  %2726 = vmatpush3.bf16.msra.mxu1 %v2953_v58  ;;  %v3010_v41 = vld [vmem:[%s3871_s3 + $0x38] sm:$0xff]  }
  0x38   : > { %2743 = vmatprep.subr.bf16.mxu1 %v3010_v41 }
  0x39   : > { %2607 = vmatpush3.bf16.msra.mxu0 %v2927_v42  ;;  %v3011_v42 = vld [vmem:[%s3871_s3 + $0x30] sm:$0xff]  }
  0x3a   : > { %2608 = vmatprep.subr.bf16.mxu0 %v2932_v45  ;;  %v3014_v45 = vld [vmem:[%s3871_s3 + $0x18] sm:$0xff]  }
  0x3c   : > { %1147 = vmatmul.mubr.bf16.gmra.mxu0 %v2923_v39  ;;  %v3007_v39 = vld [vmem:[%s3352_s24 + $0x19c] ss:$28 sps:$4 sm:$0xff]   ;;  %s3102_s24 = sshll.u32 %s3160_s28, 4  ;;  %s3103_s24 = int_to_ptr.vmem [resolvable:$false] %s3102_s24 }
  0x3d   : > { %1154 = vmatprep.mubr.bf16.mxu0 %v2929_v44  ;;  %2609 = vmatpush3.bf16.msra.mxu0 %v2935_v47  ;;  %v3013_v44 = vld [vmem:[%s3871_s3 + $0x20] sm:$0xff]   ;;  %v3016_v47 = vld [vmem:[%s3871_s3 + $0x8] sm:$0xff]   ;;  %s3104_s29 = scalar_lea.vmem %s3103_s24, 4096  ;;  %p3105_p0 = scmp.lt.s32.totalorder %s3822_s21, %s3103_s24 }
  0x3e   : > { %1244 = vmatmul.mubr.bf16.gmra.mxu1 %v2928_v43  ;;  %2610 = vmatprep.subr.bf16.mxu0 %v2940_v50  ;;  %v3012_v43 = vld [vmem:[%s3871_s3 + $0x28] sm:$0xff]   ;;  %v3505_v50 = vld [vmem:[%s3870_s2] ss:$0 sm:$0xff]  ;;  %p3106_p1 = scmp.lt.s32.totalorder %s3104_s29, %s3098_s27 }
  0x3f   : > { %1251 = vmatprep.mubr.bf16.mxu1 %v2933_v46  ;;  %v3015_v46 = vld [vmem:[%s3871_s3 + $0x10] sm:$0xff]  }
  0x40   : > { %p3107_p2 = por %p3106_p1, %p3105_p0 }
  0x41   : > { %2611 = vmatpush3.bf16.msra.mxu0 %v2943_v52 }
  0x42   : > { %2612 = vmatprep.subr.bf16.mxu0 %v2948_v54  ;;  %p3108_p3 = pnand %p3107_p2, %p3101_p13 }
  0x44   : > { %1155 = vmatmul.mubr.bf16.gmra.mxu0 %v2931_v48  ;;  %v3017_v48 = vld [vmem:[%s3871_s3] sm:$0xff]  }
  0x45   : > { %1162 = vmatprep.mubr.bf16.mxu0 %v2937_v49  ;;  %2613 = vmatpush3.bf16.msra.mxu0 %v2951_v56 }
  0x46   : > { %1252 = vmatmul.mubr.bf16.gmra.mxu1 %v2936_v51  ;;  %2614 = vmatprep.subr.bf16.mxu0 %v2957_v60 }
  0x47   : > { %1259 = vmatprep.mubr.bf16.mxu1 %v2941_v53 }
  0x49   : > { %2615 = vmatpush3.bf16.msra.mxu0 %v2960_v62 }
  0x4a   : > { %2616 = vmatprep.subr.bf16.mxu0 %v2965_v0  ;;  %v3019_v0 = vld [vmem:[%s3873_s5 + $0x30] sm:$0xff]  }
  0x4c   : > { %1163 = vmatmul.mubr.bf16.gmra.mxu0 %v2939_v55 }
  0x4d   : > { %1170 = vmatprep.mubr.bf16.mxu0 %v2945_v57  ;;  %2617 = vmatpush3.bf16.msra.mxu0 %v2968_v2 }
  0x4e   : > { %1260 = vmatmul.mubr.bf16.gmra.mxu1 %v2944_v59  ;;  %2618 = vmatprep.subr.bf16.mxu0 %v2973_v5 }
  0x4f   : > { %1267 = vmatprep.mubr.bf16.mxu1 %v2949_v61 }
  0x51   : > { %2619 = vmatpush3.bf16.msra.mxu0 %v2976_v6 }
  0x54   : > { %1171 = vmatmul.mubr.bf16.gmra.mxu0 %v2947_v63  ;;  %v3018_v63 = vld [vmem:[%s3873_s5 + $0x38] sm:$0xff]  }
  0x55   : > { %1178 = vmatprep.mubr.bf16.mxu0 %v2954_v1  ;;  %2775 = vmatprep.subr.bf16.mxu0 %v3018_v63 }
  0x56   : > { %1268 = vmatmul.mubr.bf16.gmra.mxu1 %v2952_v3 }
  0x57   : > { %1275 = vmatprep.mubr.bf16.mxu1 %v2958_v4 }
  0x5c   : > { %1179 = vmatmul.mubr.bf16.gmra.mxu0 %v2956_v7  ;;  %v3020_v7 = vld [vmem:[%s3873_s5 + $0x28] sm:$0xff]  }
  0x5d   : > { %1186 = vmatprep.mubr.bf16.mxu0 %v2962_v8 }
  0x5e   : > { %1276 = vmatmul.mubr.bf16.gmra.mxu1 %v2961_v9 }
  0x5f   : > { %1283 = vmatprep.mubr.bf16.mxu1 %v2966_v10 }
  0x64   : > { %1187 = vmatmul.mubr.bf16.gmra.mxu0 %v2964_v11 }
  0x65   : > { %1194 = vmatprep.mubr.bf16.mxu0 %v2970_v12 }
  0x66   : > { %1284 = vmatmul.mubr.bf16.gmra.mxu1 %v2969_v13 }
  0x67   : > { %1291 = vmatprep.mubr.bf16.mxu1 %v2974_v14  ;;  %v3021_v14 = vld [vmem:[%s3873_s5 + $0x20] sm:$0xff]  }
  0x6c   : > { %1195 = vmatmul.mubr.bf16.gmra.mxu0 %v2972_v15 }
  0x6d   : > { %1332 = vmatprep.mubr.bf16.mxu0 %v2980_v17 }
  0x6e   : > { %1292 = vmatmul.mubr.bf16.gmra.mxu1 %v2977_v16 }
  0x6f   : > { %2727 = vmatprep.mubr.msk.bf16.mxu1 %vm1081_vm0, %v2981_v18 }
  0x74   : > { %1333 = vmatmul.mubr.bf16.vlgmr.msra.gmra.mxu0 %v2978_v19 }
  0x75   : > { %1340 = vmatprep.mubr.bf16.mxu0 %v2983_v20  ;;  %2776 = vmatpush3.bf16.msra.mxu0 %v3018_v63 }
  0x76   : > { %2728 = vmatmul.mubr.msk.bf16.vlgmr.msra.gmra.mxu1 %vm1081_vm0, %v2982_v21  ;;  %2777 = vmatprep.subr.bf16.mxu0 %v3019_v0  ;;  %v3022_v21 = vld [vmem:[%s3873_s5 + $0x18] sm:$0xff]  }
  0x77   : > { %2731 = vmatprep.mubr.msk.bf16.mxu1 %vm1081_vm0, %v2989_v22  ;;  %2744 = vmatpush3.bf16.msra.mxu1 %v3010_v41 }
  0x78   : > { %2745 = vmatprep.subr.bf16.mxu1 %v3011_v42 }
  0x79   : > { %2778 = vmatpush3.bf16.msra.mxu0 %v3019_v0 }
  0x7a   : > { %2779 = vmatprep.subr.bf16.mxu0 %v3020_v7 }
  0x7b   : > { %2746 = vmatpush3.bf16.msra.mxu1 %v3011_v42 }
  0x7c   : > { %1341 = vmatmul.mubr.bf16.gmra.mxu0 %v2985_v23  ;;  %2747 = vmatprep.subr.bf16.mxu1 %v3012_v43 }
  0x7d   : > { %1348 = vmatprep.mubr.bf16.mxu0 %v2986_v24  ;;  %2780 = vmatpush3.bf16.msra.mxu0 %v3020_v7 }
  0x7e   : > { %2732 = vmatmul.mubr.msk.bf16.gmra.mxu1 %vm1081_vm0, %v2990_v25  ;;  %2781 = vmatprep.subr.bf16.mxu0 %v3021_v14 }
  0x7f   : > { %2735 = vmatprep.mubr.msk.bf16.mxu1 %vm1081_vm0, %v2997_v26  ;;  %2748 = vmatpush3.bf16.msra.mxu1 %v3012_v43 }
  0x80   : > { %2749 = vmatprep.subr.bf16.mxu1 %v3013_v44 }
  0x81   : > { %2782 = vmatpush3.bf16.msra.mxu0 %v3021_v14 }
  0x82   : > { %2783 = vmatprep.subr.bf16.mxu0 %v3022_v21 }
  0x83   : > { %2750 = vmatpush3.bf16.msra.mxu1 %v3013_v44 }
  0x84   : > { %1349 = vmatmul.mubr.bf16.gmra.mxu0 %v2988_v27  ;;  %2751 = vmatprep.subr.bf16.mxu1 %v3014_v45 }
  0x85   : > { %1356 = vmatprep.mubr.bf16.mxu0 %v2991_v28  ;;  %2784 = vmatpush3.bf16.msra.mxu0 %v3022_v21 }
  0x86   : > { %2736 = vmatmul.mubr.msk.bf16.gmra.mxu1 %vm1081_vm0, %v2998_v29 }
  0x87   : > { %2739 = vmatprep.mubr.msk.bf16.mxu1 %vm1081_vm0, %v3005_v30  ;;  %2752 = vmatpush3.bf16.msra.mxu1 %v3014_v45 }
  0x88   : > { %2753 = vmatprep.subr.bf16.mxu1 %v3015_v46 }
  0x8b   : > { %2754 = vmatpush3.bf16.msra.mxu1 %v3015_v46 }
  0x8c   : > { %1357 = vmatmul.mubr.bf16.gmra.mxu0 %v2993_v31  ;;  %2755 = vmatprep.subr.bf16.mxu1 %v3016_v47 }
  0x8d   : > { %1364 = vmatprep.mubr.bf16.mxu0 %v2994_v32 }
  0x8e   : > { %2740 = vmatmul.mubr.msk.bf16.gmra.mxu1 %vm1081_vm0, %v3006_v33 }
  0x8f   : > { %2756 = vmatpush3.bf16.msra.mxu1 %v3016_v47 }
  0x90   : > { %2757 = vmatprep.subr.bf16.mxu1 %v3017_v48 }
  0x93   : > { %2758 = vmatpush3.bf16.msra.mxu1 %v3017_v48 }
  0x94   : > { %1365 = vmatmul.mubr.bf16.gmra.mxu0 %v2996_v34 }
  0x95   : > { %1372 = vmatprep.mubr.bf16.mxu0 %v2999_v35 }
  0x9c   : > { %1373 = vmatmul.mubr.bf16.gmra.mxu0 %v3001_v36 }
  0x9d   : > { %1380 = vmatprep.mubr.bf16.mxu0 %v3002_v37 }
  0xa4   : > { %1381 = vmatmul.mubr.bf16.gmra.mxu0 %v3004_v38 }
  0xa5   : > { %1388 = vmatprep.mubr.bf16.mxu0 %v3007_v39 }
  0xac   : > { %1389 = vmatmul.mubr.bf16.gmra.mxu0 %v3009_v40 }
  0xf4   : > { %v2492_v49 = vpop.f32.mrf.mxu0 }
  0xf6   : > { %v2493_v51 = vpop.f32.mrf.mxu0  ;;  %v2556_v53 = vpop.f32.mrf.mxu1 }
  0xf7   : > { %v2494_v52 = vadd.f32 %v2493_v51, %v2492_v49 }
  0xf8   : > { %v3507_v54 = vpop.f32.mrf.mxu0  ;;  %v2557_v56 = vpop.f32.mrf.mxu1 }
  0xf9   : > { %v1141_v55 = vadd.f32 %v2494_v52, %v3505_v50  ;;  %v2558_v57 = vadd.f32 %v2557_v56, %v2556_v53 }
  0xfa   : > { %v3510_v58 = vpop.f32.mrf.mxu0  ;;  %v3512_v59 = vpop.f32.mrf.mxu1 }
  0xfb   : > { %v3514_v60 = vadd.f32 %v2558_v57, %v1141_v55 }
  0xfc   : > { %v2498_v61 = vpop.f32.mrf.mxu0  ;;  %v3516_v62 = vpop.f32.mrf.mxu1 }
  0xfe   : > { %v2499_v1 = vpop.f32.mrf.mxu0  ;;  %v2562_v3 = vpop.f32.mrf.mxu1 }
  0xff   : > { %v2500_v2 = vadd.f32 %v2499_v1, %v2498_v61 }
 0x100   : > { %v3524_v4 = vpop.f32.mrf.mxu0  ;;  %v2563_v6 = vpop.f32.mrf.mxu1 }
 0x101   : > { %v1149_v5 = vadd.f32 %v2500_v2, %v3505_v50  ;;  %v2564_v8 = vadd.f32 %v2563_v6, %v2562_v3 }
 0x102   : > { %v3530_v9 = vpop.f32.mrf.mxu0  ;;  %v3532_v10 = vpop.f32.mrf.mxu1 }
 0x103   : > { %v3534_v11 = vadd.f32 %v2564_v8, %v1149_v5 }
 0x104   : > { %v2504_v12 = vpop.f32.mrf.mxu0  ;;  %v3536_v13 = vpop.f32.mrf.mxu1 }
 0x106   : > { %v2505_v15 = vpop.f32.mrf.mxu0  ;;  %v2568_v17 = vpop.f32.mrf.mxu1 }
 0x107   : > { %v2506_v16 = vadd.f32 %v2505_v15, %v2504_v12 }
 0x108   : > { %v3541_v18 = vpop.f32.mrf.mxu0  ;;  %v2569_v20 = vpop.f32.mrf.mxu1 }
 0x109   : > { %v1157_v19 = vadd.f32 %v2506_v16, %v3505_v50  ;;  %v2570_v22 = vadd.f32 %v2569_v20, %v2568_v17 }
 0x10a   : > { %v3547_v23 = vpop.f32.mrf.mxu0  ;;  %v3549_v24 = vpop.f32.mrf.mxu1 }
 0x10b   : > { %v3551_v25 = vadd.f32 %v2570_v22, %v1157_v19 }
 0x10c   : > { %v2510_v26 = vpop.f32.mrf.mxu0  ;;  %v3553_v27 = vpop.f32.mrf.mxu1 }
 0x10e   : > { %v2511_v28 = vpop.f32.mrf.mxu0  ;;  %v2574_v30 = vpop.f32.mrf.mxu1 }
 0x10f   : > { %v2512_v29 = vadd.f32 %v2511_v28, %v2510_v26 }
 0x110   : > { %v3555_v31 = vpop.f32.mrf.mxu0  ;;  %v2575_v33 = vpop.f32.mrf.mxu1 }
 0x111   : > { %v1165_v32 = vadd.f32 %v2512_v29, %v3505_v50  ;;  %v2576_v34 = vadd.f32 %v2575_v33, %v2574_v30 }
 0x112   : > { %v3558_v35 = vpop.f32.mrf.mxu0  ;;  %v3560_v36 = vpop.f32.mrf.mxu1 }
 0x113   : > { %v3562_v37 = vadd.f32 %v2576_v34, %v1165_v32 }
 0x114   : > { %v2516_v38 = vpop.f32.mrf.mxu0  ;;  %v3564_v39 = vpop.f32.mrf.mxu1 }
 0x116   : > { %v2517_v40 = vpop.f32.mrf.mxu0  ;;  %v2580_v42 = vpop.f32.mrf.mxu1 }
 0x117   : > { %v2518_v41 = vadd.f32 %v2517_v40, %v2516_v38 }
 0x118   : > { %v3566_v43 = vpop.f32.mrf.mxu0  ;;  %v2581_v45 = vpop.f32.mrf.mxu1 }
 0x119   : > { %v1173_v44 = vadd.f32 %v2518_v41, %v3505_v50  ;;  %v2582_v46 = vadd.f32 %v2581_v45, %v2580_v42  ;;  %v2497_v41 = vadd.f32 %v3510_v58, %v3507_v54 }
 0x11a   : > { %v3569_v47 = vpop.f32.mrf.mxu0  ;;  %v3571_v48 = vpop.f32.mrf.mxu1 }
 0x11b   : > { %v3573_v49 = vadd.f32 %v2582_v46, %v1173_v44 }
 0x11c   : > { %v2522_v51 = vpop.f32.mrf.mxu0  ;;  %v3575_v52 = vpop.f32.mrf.mxu1 }
 0x11e   : > { %v2523_v53 = vpop.f32.mrf.mxu0  ;;  %v2586_v56 = vpop.f32.mrf.mxu1 }
 0x11f   : > { %v2524_v55 = vadd.f32 %v2523_v53, %v2522_v51  ;;  %v1144_v53 = vadd.f32 %v2497_v41, %v3505_v50 }
 0x120   : > { %v3577_v57 = vpop.f32.mrf.mxu0  ;;  %v2587_v63 = vpop.f32.mrf.mxu1 }
 0x121   : > { %v1181_v61 = vadd.f32 %v2524_v55, %v3505_v50  ;;  %v2588_v0 = vadd.f32 %v2587_v63, %v2586_v56  ;;  %v2561_v55 = vadd.f32 %v3516_v62, %v3512_v59  ;;  %v2567_v62 = vadd.f32 %v3536_v13, %v3532_v10 }
 0x122   : > { %v3580_v1 = vpop.f32.mrf.mxu0  ;;  %v3582_v2 = vpop.f32.mrf.mxu1 }
 0x123   : > { %v3584_v3 = vadd.f32 %v2588_v0, %v1181_v61  ;;  %v1241_v58 = vadd.f32 %v2561_v55, %v1144_v53 }
 0x124   : > { %v2528_v5 = vpop.f32.mrf.mxu0  ;;  %v3586_v6 = vpop.f32.mrf.mxu1 }
 0x126   : > { %v2529_v7 = vpop.f32.mrf.mxu0  ;;  %v2592_v12 = vpop.f32.mrf.mxu1 }
 0x127   : > { %v2530_v8 = vadd.f32 %v2529_v7, %v2528_v5  ;;  %v2503_v7 = vadd.f32 %v3530_v9, %v3524_v4 }
 0x128   : > { %v3588_v14 = vpop.f32.mrf.mxu0  ;;  %v2593_v16 = vpop.f32.mrf.mxu1 }
 0x129   : > { %v1189_v15 = vadd.f32 %v2530_v8, %v3505_v50  ;;  %v2594_v17 = vadd.f32 %v2593_v16, %v2592_v12  ;;  %v1152_v59 = vadd.f32 %v2503_v7, %v3505_v50 }
 0x12a   : > { %v3591_v19 = vpop.f32.mrf.mxu0  ;;  %v3593_v20 = vpop.f32.mrf.mxu1 }
 0x12b   : > { %v3595_v21 = vadd.f32 %v2594_v17, %v1189_v15  ;;  %v1249_v41 = vadd.f32 %v2567_v62, %v1152_v59 }
 0x12c   : > { %v2534_v22 = vpop.f32.mrf.mxu0  ;;  %v3597_v26 = vpop.f32.mrf.mxu1 }
 0x12e   : > { %v2535_v28 = vpop.f32.mrf.mxu0  ;;  %v2598_v30 = vpop.f32.mrf.mxu1 }
 0x12f   : > { %v2536_v29 = vadd.f32 %v2535_v28, %v2534_v22 }
 0x130   : > { %v3599_v32 = vpop.f32.mrf.mxu0  ;;  %v2599_v34 = vpop.f32.mrf.mxu1 }
 0x131   : > { %v1197_v33 = vadd.f32 %v2536_v29, %v3505_v50  ;;  %v2600_v38 = vadd.f32 %v2599_v34, %v2598_v30 }
 0x132   : > { %v3602_v40 = vpop.f32.mrf.mxu0  ;;  %v3606_v42 = vpop.f32.mrf.mxu1 }
 0x133   : > { %v3608_v44 = vadd.f32 %v2600_v38, %v1197_v33 }
 0x134   : > { %v2620_v45 = vpop.f32.mrf.mxu0  ;;  %v3610_v46 = vpop.f32.mrf.mxu1 }
 0x136   : > { %v2621_v51 = vpop.f32.mrf.mxu0  ;;  %v2729_v61 = vpop.f32.mrf.mxu1 }
 0x137   : > { %v2622_v56 = vadd.f32 %v2621_v51, %v2620_v45  ;;  %v2509_v45 = vadd.f32 %v3547_v23, %v3541_v18 }
 0x138   : > { %v2623_v63 = vpop.f32.mrf.mxu0  ;;  %v1431_v5 = vpop.f32.mrf.mxu1 }
 0x139   : > { %v1335_v0 = vadd.f32 %v2622_v56, %v3514_v60  ;;  %v1160_v13 = vadd.f32 %v2509_v45, %v3505_v50 }
 0x13a   : > { %v2624_v54 = vpop.f32.mrf.mxu0  ;;  %v2730_v12 = vpop.f32.mrf.mxu1 }
 0x13b   : > { %v2625_v8 = vadd.f32 %v2624_v54, %v2623_v63  ;;  %v1432_v16 = vadd.f32 %v1431_v5, %v1335_v0  ;;  %v2573_v5 = vadd.f32 %v3553_v27, %v3549_v24 }
 0x13c   : > { %v2626_v15 = vpop.f32.mrf.mxu0  ;;  %v1434_v22 = vpop.f32.mrf.mxu1 }
 0x13d   : > { %v1338_v17 = vadd.f32 %v2625_v8, %v1241_v58  ;;  %v1494_v34 = vmax.f32 %v1432_v16, 0.0  ;;  %v1257_v16 = vadd.f32 %v2573_v5, %v1160_v13 }
 0x13e   : > { %v2627_v28 = vpop.f32.mrf.mxu0  ;;  %v2733_v33 = vpop.f32.mrf.mxu1 }
 0x13f   : > { %v2628_v29 = vadd.f32 %v2627_v28, %v2626_v15  ;;  %v1435_v60 = vadd.f32 %v1434_v22, %v1338_v17 }
 0x140   : > { %v2629_v30 = vpop.f32.mrf.mxu0  ;;  %v1447_v56 = vpop.f32.mrf.mxu1 }
 0x141   : > { %v1343_v38 = vadd.f32 %v2628_v29, %v3534_v11  ;;  %v1495_v4 = vmax.f32 %v1435_v60, 0.0  ;;  %v2579_v29 = vadd.f32 %v3564_v39, %v3560_v36 }
 0x142   : > { %v2630_v9 = vpop.f32.mrf.mxu0  ;;  %v2734_v7 = vpop.f32.mrf.mxu1 }
 0x143   : > { %v1510_v51 = vpack.c.bf16 %v1495_v4, %v1494_v34  ;;  %v2631_v53 = vadd.f32 %v2630_v9, %v2629_v30  ;;  %v1440_v63 = vadd.f32 %v2729_v61, %v1343_v38  ;;  %v2515_v61 = vadd.f32 %v3558_v35, %v3555_v31 }
 0x144   : > { %v2632_v55 = vpop.f32.mrf.mxu0  ;;  %v1450_v59 = vpop.f32.mrf.mxu1 }
 0x145   : > { %v1346_v0 = vadd.f32 %v2631_v53, %v1249_v41  ;;  %2759 = vmatprep.mubr.bf16.mxu1 %v1510_v51  ;;  %v1496_v8 = vmax.f32 %v1440_v63, 0.0  ;;  %v2521_v41 = vadd.f32 %v3569_v47, %v3566_v43 }
 0x146   : > { %v2633_v10 = vpop.f32.mrf.mxu0  ;;  %v2737_v34 = vpop.f32.mrf.mxu1 }
 0x147   : > { %v1443_v11 = vadd.f32 %v2730_v12, %v1346_v0  ;;  %v2634_v54 = vadd.f32 %v2633_v10, %v2632_v55  ;;  %v1168_v12 = vadd.f32 %v2515_v61, %v3505_v50  ;;  %v1176_v39 = vadd.f32 %v2521_v41, %v3505_v50 }
 0x148   : > { %v2635_v58 = vpop.f32.mrf.mxu0  ;;  %v1463_v55 = vpop.f32.mrf.mxu1  ;;  %v2585_v0 = vadd.f32 %v3575_v52, %v3571_v48  ;;  %v2591_v61 = vadd.f32 %v3586_v6, %v3582_v2 }
 0x149   : > { %v1497_v15 = vmax.f32 %v1443_v11, 0.0  ;;  %v1351_v18 = vadd.f32 %v2634_v54, %v3551_v25  ;;  %v1265_v9 = vadd.f32 %v2579_v29, %v1168_v12 }
 0x14a   : > { %v2636_v23 = vpop.f32.mrf.mxu0  ;;  %v2738_v5 = vpop.f32.mrf.mxu1 }
 0x14b   : > { %v1511_v17 = vpack.c.bf16 %v1497_v15, %v1496_v8  ;;  %v2637_v22 = vadd.f32 %v2636_v23, %v2635_v58  ;;  %v1448_v62 = vadd.f32 %v1447_v56, %v1351_v18  ;;  %v1273_v58 = vadd.f32 %v2585_v0, %v1176_v39 }
 0x14c   : > { %v2638_v28 = vpop.f32.mrf.mxu0  ;;  %v1466_v23 = vpop.f32.mrf.mxu1  ;;  %v2603_v0 = vadd.f32 %v3610_v46, %v3606_v42  ;;  %v3023_v42 = vld [vmem:[%s3873_s5 + $0x10] sm:$0xff]   ;;  %v3025_v46 = vld [vmem:[%s3873_s5] sm:$0xff]  }
 0x14d   : > { %2760 = vmatmul.mubr.bf16.vlgmr.msra.gmra.mxu1 %v1511_v17  ;;  %v1354_v24 = vadd.f32 %v2637_v22, %v1257_v16  ;;  %v1498_v38 = vmax.f32 %v1448_v62, 0.0  ;;  %2785 = vmatprep.subr.bf16.mxu0 %v3023_v42 }
 0x14e   : > { %v2639_v27 = vpop.f32.mrf.mxu0  ;;  %2786 = vmatpush3.bf16.msra.mxu0 %v3023_v42 }
 0x14f   : > { %v2640_v60 = vadd.f32 %v2639_v27, %v2638_v28  ;;  %v1451_v25 = vadd.f32 %v1450_v59, %v1354_v24  ;;  %v2741_v28 = vpop.f32.mrf.mxu1  ;;  %v2533_v27 = vadd.f32 %v3591_v19, %v3588_v14 }
 0x150   : > { %v2641_v30 = vpop.f32.mrf.mxu0 }
 0x151   : > { %v1359_v31 = vadd.f32 %v2640_v60, %v3562_v37  ;;  %v1499_v35 = vmax.f32 %v1451_v25, 0.0  ;;  %v1479_v25 = vpop.f32.mrf.mxu1  ;;  %v1192_v6 = vadd.f32 %v2533_v27, %v3505_v50 }
 0x152   : > { %v2642_v4 = vpop.f32.mrf.mxu0 }
 0x153   : > { %v1512_v45 = vpack.c.bf16 %v1499_v35, %v1498_v38  ;;  %v2643_v51 = vadd.f32 %v2642_v4, %v2641_v30  ;;  %v1456_v56 = vadd.f32 %v2733_v33, %v1359_v31  ;;  %v2527_v33 = vadd.f32 %v3580_v1, %v3577_v57 }
 0x154   : > { %v2644_v53 = vpop.f32.mrf.mxu0  ;;  %v2597_v31 = vadd.f32 %v3597_v26, %v3593_v20 }
 0x155   : > { %v1362_v63 = vadd.f32 %v2643_v51, %v1265_v9  ;;  %2763 = vmatprep.mubr.bf16.mxu1 %v1512_v45  ;;  %v1500_v11 = vmax.f32 %v1456_v56, 0.0  ;;  %v2742_v9 = vpop.f32.mrf.mxu1 }
 0x156   : > { %v2645_v36 = vpop.f32.mrf.mxu0  ;;  %v1289_v51 = vadd.f32 %v2597_v31, %v1192_v6 }
 0x157   : > { %v1459_v37 = vadd.f32 %v2734_v7, %v1362_v63  ;;  %v2646_v10 = vadd.f32 %v2645_v36, %v2644_v53  ;;  %v1184_v7 = vadd.f32 %v2527_v33, %v3505_v50  ;;  %v1482_v63 = vpop.f32.mrf.mxu1 }
 0x158   : > { %v2647_v13 = vpop.f32.mrf.mxu0 }
 0x159   : > { %v1501_v54 = vmax.f32 %v1459_v37, 0.0  ;;  %v1367_v43 = vadd.f32 %v2646_v10, %v3573_v49  ;;  %v1281_v24 = vadd.f32 %v2591_v61, %v1184_v7 }
 0x15a   : > { %v2648_v47 = vpop.f32.mrf.mxu0 }
 0x15b   : > { %v2649_v8 = vadd.f32 %v2648_v47, %v2647_v13  ;;  %v1513_v15 = vpack.c.bf16 %v1501_v54, %v1500_v11  ;;  %v1464_v16 = vadd.f32 %v1463_v55, %v1367_v43 }
 0x15c   : > { %v2650_v18 = vpop.f32.mrf.mxu0 }
 0x15d   : > { %2764 = vmatmul.mubr.bf16.gmra.mxu1 %v1513_v15  ;;  %v1370_v48 = vadd.f32 %v2649_v8, %v1273_v58  ;;  %v1502_v59 = vmax.f32 %v1464_v16, 0.0  ;;  %v3028_v16 = vld [vmem:[%s3875_s7 + $0x28] sm:$0xff]  }
 0x15e   : > { %v2651_v52 = vpop.f32.mrf.mxu0 }
 0x15f   : > { %v2652_v17 = vadd.f32 %v2651_v52, %v2650_v18  ;;  %v1467_v49 = vadd.f32 %v1466_v23, %v1370_v48  ;;  %v3026_v18 = vld [vmem:[%s3875_s7 + $0x38] sm:$0xff]   ;;  %v3027_v23 = vld [vmem:[%s3875_s7 + $0x30] sm:$0xff]   ;;  %v3029_v48 = vld [vmem:[%s3875_s7 + $0x20] sm:$0xff]  }
 0x160   : > { %v2653_v22 = vpop.f32.mrf.mxu0  ;;  %2807 = vmatprep.subr.bf16.mxu1 %v3026_v18  ;;  %v3030_v52 = vld [vmem:[%s3875_s7 + $0x18] sm:$0xff]  }
 0x161   : > { %v1375_v57 = vadd.f32 %v2652_v17, %v3584_v3  ;;  %v1503_v1 = vmax.f32 %v1467_v49, 0.0  ;;  %2808 = vmatpush3.bf16.msra.mxu1 %v3026_v18  ;;  %v2443_v17 = vld [vmem:[%s3872_s4] ss:$0 sm:$0xff] }
 0x162   : > { %v2654_v62 = vpop.f32.mrf.mxu0  ;;  %2809 = vmatprep.subr.bf16.mxu1 %v3027_v23  ;;  %v3033_v18 = vld [vmem:[%s3875_s7] sm:$0xff]  }
 0x163   : > { %v1514_v12 = vpack.c.bf16 %v1503_v1, %v1502_v59  ;;  %v2655_v29 = vadd.f32 %v2654_v62, %v2653_v22  ;;  %v1472_v30 = vadd.f32 %v2737_v34, %v1375_v57  ;;  %v2539_v34 = vadd.f32 %v3602_v40, %v3599_v32 }
 0x164   : > { %v2656_v60 = vpop.f32.mrf.mxu0 }
 0x165   : > { %v1378_v38 = vadd.f32 %v2655_v29, %v1281_v24  ;;  %2767 = vmatprep.mubr.bf16.mxu1 %v1514_v12  ;;  %v1504_v41 = vmax.f32 %v1472_v30, 0.0  ;;  %v1200_v39 = vadd.f32 %v2539_v34, %v3505_v50  ;;  %2810 = vmatpush3.bf16.msra.mxu1 %v3027_v23 }
 0x166   : > { %v2657_v2 = vpop.f32.mrf.mxu0  ;;  %2811 = vmatprep.subr.bf16.mxu1 %v3028_v16 }
 0x167   : > { %v1475_v3 = vadd.f32 %v2738_v5, %v1378_v38  ;;  %v2658_v35 = vadd.f32 %v2657_v2, %v2656_v60  ;;  %v1297_v11 = vadd.f32 %v2603_v0, %v1200_v39 }
 0x168   : > { %v2659_v4 = vpop.f32.mrf.mxu0 }
 0x169   : > { %v1505_v45 = vmax.f32 %v1475_v3, 0.0  ;;  %v1383_v14 = vadd.f32 %v2658_v35, %v3595_v21  ;;  %2812 = vmatpush3.bf16.msra.mxu1 %v3028_v16 }
 0x16a   : > { %v2660_v19 = vpop.f32.mrf.mxu0  ;;  %2813 = vmatprep.subr.bf16.mxu1 %v3029_v48 }
 0x16b   : > { %v2661_v53 = vadd.f32 %v2660_v19, %v2659_v4  ;;  %v1515_v55 = vpack.c.bf16 %v1505_v45, %v1504_v41  ;;  %v1480_v36 = vadd.f32 %v1479_v25, %v1383_v14 }
 0x16c   : > { %v2662_v56 = vpop.f32.mrf.mxu0 }
 0x16d   : > { %2768 = vmatmul.mubr.bf16.gmra.mxu1 %v1515_v55  ;;  %v1386_v20 = vadd.f32 %v2661_v53, %v1289_v51  ;;  %v1506_v13 = vmax.f32 %v1480_v36, 0.0 }
 0x16e   : > { %v2663_v26 = vpop.f32.mrf.mxu0  ;;  %2814 = vmatpush3.bf16.msra.mxu1 %v3029_v48  ;;  %v2452_v48 = vld [vmem:[%s3874_s6] ss:$0 sm:$0xff] }
 0x16f   : > { %v2664_v37 = vadd.f32 %v2663_v26, %v2662_v56  ;;  %v1483_v21 = vadd.f32 %v1482_v63, %v1386_v20  ;;  %2815 = vmatprep.subr.bf16.mxu1 %v3030_v52 }
 0x170   : > { %v2665_v10 = vpop.f32.mrf.mxu0 }
 0x171   : > { %v1391_v5 = vadd.f32 %v2664_v37, %v3608_v44  ;;  %v1507_v32 = vmax.f32 %v1483_v21, 0.0  ;;  %v3024_v44 = vld [vmem:[%s3873_s5 + $0x8] sm:$0xff]  }
 0x172   : > { %v2666_v40 = vpop.f32.mrf.mxu0  ;;  %2787 = vmatprep.subr.bf16.mxu0 %v3024_v44  ;;  %2816 = vmatpush3.bf16.msra.mxu1 %v3030_v52 }
 0x173   : > { %v1516_v54 = vpack.c.bf16 %v1507_v32, %v1506_v13  ;;  %v2667_v43 = vadd.f32 %v2666_v40, %v2665_v10  ;;  %v1488_v47 = vadd.f32 %v2741_v28, %v1391_v5  ;;  %2788 = vmatpush3.bf16.msra.mxu0 %v3024_v44  ;;  %v3031_v44 = vld [vmem:[%s3875_s7 + $0x10] sm:$0xff]  }
 0x174   : > { %2789 = vmatprep.subr.bf16.mxu0 %v3025_v46  ;;  %2817 = vmatprep.subr.bf16.mxu1 %v3031_v44 }
 0x175   : > { %v1394_v58 = vadd.f32 %v2667_v43, %v1297_v11  ;;  %2771 = vmatprep.mubr.bf16.mxu1 %v1516_v54  ;;  %v1508_v8 = vmax.f32 %v1488_v47, 0.0 }
 0x176   : > { %2818 = vmatpush3.bf16.msra.mxu1 %v3031_v44 }
 0x177   : > { %v1491_v33 = vadd.f32 %v2742_v9, %v1394_v58  ;;  %2790 = vmatpush3.bf16.msra.mxu0 %v3025_v46  ;;  %v3032_v46 = vld [vmem:[%s3875_s7 + $0x8] sm:$0xff]  }
 0x178   : > { %2819 = vmatprep.subr.bf16.mxu1 %v3032_v46 }
 0x179   : > { %v1509_v50 = vmax.f32 %v1491_v33, 0.0 }
 0x17a   : > { %2820 = vmatpush3.bf16.msra.mxu1 %v3032_v46 }
 0x17b   : > { %v1517_v15 = vpack.c.bf16 %v1509_v50, %v1508_v8  ;;  %2821 = vmatprep.subr.bf16.mxu1 %v3033_v18 }
 0x17d   : > { %2772 = vmatmul.mubr.bf16.gmra.mxu1 %v1517_v15 }
 0x17e   : > { %2822 = vmatpush3.bf16.msra.mxu1 %v3033_v18 }
 0x20d   : > { %v2761_v7 = vpop.f32.mrf.mxu1 }
 0x20e   : > { %v1632_v59 = vadd.f32 %v2761_v7, %v2443_v17 }
 0x20f   : > { %v1623_v61 = vpop.f32.mrf.mxu1 }
 0x210   : > { %v1624_v22 = vadd.f32 %v2443_v17, %v1623_v61  ;;  %v1688_v12 = vmax.f32 %v1632_v59, 0.0 }
 0x211   : > { %v2762_v49 = vpop.f32.mrf.mxu1 }
 0x212   : > { %v1635_v28 = vadd.f32 %v2762_v49, %v2443_v17  ;;  %v1686_v24 = vmax.f32 %v1624_v22, 0.0 }
 0x213   : > { %v1626_v57 = vpop.f32.mrf.mxu1 }
 0x214   : > { %v1627_v1 = vadd.f32 %v2443_v17, %v1626_v57  ;;  %v1689_v62 = vmax.f32 %v1635_v28, 0.0 }
 0x216   : > { %v1687_v27 = vmax.f32 %v1627_v1, 0.0  ;;  %v1703_v60 = vpack.c.bf16 %v1689_v62, %v1688_v12 }
 0x218   : > { %v1702_v29 = vpack.c.bf16 %v1687_v27, %v1686_v24 }
 0x21a   : > { %2791 = vmatprep.mubr.bf16.mxu0 %v1702_v29 }
 0x21b   : > { %2792 = vmatmul.mubr.bf16.vlgmr.msra.gmra.mxu0 %v1703_v60 }
 0x21d   : > { %v2765_v25 = vpop.f32.mrf.mxu1 }
 0x21e   : > { %v1648_v31 = vadd.f32 %v2765_v25, %v2443_v17 }
 0x21f   : > { %v1639_v30 = vpop.f32.mrf.mxu1 }
 0x220   : > { %v1640_v2 = vadd.f32 %v2443_v17, %v1639_v30  ;;  %v1692_v45 = vmax.f32 %v1648_v31, 0.0 }
 0x221   : > { %v2766_v38 = vpop.f32.mrf.mxu1 }
 0x222   : > { %v1651_v6 = vadd.f32 %v2766_v38, %v2443_v17  ;;  %v1690_v9 = vmax.f32 %v1640_v2, 0.0 }
 0x223   : > { %v1642_v3 = vpop.f32.mrf.mxu1 }
 0x224   : > { %v1643_v35 = vadd.f32 %v2443_v17, %v1642_v3  ;;  %v1693_v4 = vmax.f32 %v1651_v6, 0.0 }
 0x226   : > { %v1691_v41 = vmax.f32 %v1643_v35, 0.0  ;;  %v1705_v19 = vpack.c.bf16 %v1693_v4, %v1692_v45 }
 0x228   : > { %v1704_v14 = vpack.c.bf16 %v1691_v41, %v1690_v9 }
 0x22a   : > { %2795 = vmatprep.mubr.bf16.mxu0 %v1704_v14 }
 0x22b   : > { %2796 = vmatmul.mubr.bf16.gmra.mxu0 %v1705_v19 }
 0x22d   : > { %v2769_v51 = vpop.f32.mrf.mxu1 }
 0x22e   : > { %v1664_v63 = vadd.f32 %v2769_v51, %v2443_v17 }
 0x22f   : > { %v1655_v34 = vpop.f32.mrf.mxu1 }
 0x230   : > { %v1656_v55 = vadd.f32 %v2443_v17, %v1655_v34  ;;  %v1696_v37 = vmax.f32 %v1664_v63, 0.0 }
 0x231   : > { %v2770_v53 = vpop.f32.mrf.mxu1 }
 0x232   : > { %v1667_v56 = vadd.f32 %v2770_v53, %v2443_v17  ;;  %v1694_v39 = vmax.f32 %v1656_v55, 0.0 }
 0x233   : > { %v1658_v36 = vpop.f32.mrf.mxu1 }
 0x234   : > { %v1659_v20 = vadd.f32 %v2443_v17, %v1658_v36  ;;  %v1697_v26 = vmax.f32 %v1667_v56, 0.0 }
 0x236   : > { %v1695_v0 = vmax.f32 %v1659_v20, 0.0  ;;  %v1707_v10 = vpack.c.bf16 %v1697_v26, %v1696_v37 }
 0x238   : > { %v1706_v21 = vpack.c.bf16 %v1695_v0, %v1694_v39 }
 0x23a   : > { %2799 = vmatprep.mubr.bf16.mxu0 %v1706_v21 }
 0x23b   : > { %2800 = vmatmul.mubr.bf16.gmra.mxu0 %v1707_v10 }
 0x23d   : > { %v2773_v13 = vpop.f32.mrf.mxu1 }
 0x23e   : > { %v1680_v54 = vadd.f32 %v2773_v13, %v2443_v17 }
 0x23f   : > { %v1671_v5 = vpop.f32.mrf.mxu1 }
 0x240   : > { %v1672_v40 = vadd.f32 %v2443_v17, %v1671_v5  ;;  %v1700_v50 = vmax.f32 %v1680_v54, 0.0 }
 0x241   : > { %v2774_v32 = vpop.f32.mrf.mxu1 }
 0x242   : > { %v1683_v11 = vadd.f32 %v2774_v32, %v2443_v17  ;;  %v1698_v33 = vmax.f32 %v1672_v40, 0.0 }
 0x243   : > { %v1674_v43 = vpop.f32.mrf.mxu1 }
 0x244   : > { %v1675_v47 = vadd.f32 %v2443_v17, %v1674_v43  ;;  %v1701_v58 = vmax.f32 %v1683_v11, 0.0 }
 0x246   : > { %v1699_v8 = vmax.f32 %v1675_v47, 0.0  ;;  %v1709_v42 = vpack.c.bf16 %v1701_v58, %v1700_v50 }
 0x248   : > { %v1708_v15 = vpack.c.bf16 %v1699_v8, %v1698_v33  ;;  %v2461_v8 = vld [vmem:[%s3876_s8] ss:$0 sm:$0xff] }
 0x24a   : > { %2803 = vmatprep.mubr.bf16.mxu0 %v1708_v15 }
 0x24b   : > { %2804 = vmatmul.mubr.bf16.gmra.mxu0 %v1709_v42 }
 0x2db   : > { %v2793_v23 = vpop.f32.mrf.mxu0 }
 0x2dc   : > { %v1824_v17 = vadd.f32 %v2793_v23, %v2452_v48 }
 0x2dd   : > { %v1815_v16 = vpop.f32.mrf.mxu0 }
 0x2de   : > { %v1816_v7 = vadd.f32 %v2452_v48, %v1815_v16  ;;  %v1880_v1 = vmax.f32 %v1824_v17, 0.0 }
 0x2df   : > { %v2794_v52 = vpop.f32.mrf.mxu0 }
 0x2e0   : > { %v1827_v61 = vadd.f32 %v2794_v52, %v2452_v48  ;;  %v1878_v59 = vmax.f32 %v1816_v7, 0.0 }
 0x2e1   : > { %v1818_v49 = vpop.f32.mrf.mxu0 }
 0x2e2   : > { %v1819_v22 = vadd.f32 %v2452_v48, %v1818_v49  ;;  %v1881_v28 = vmax.f32 %v1827_v61, 0.0 }
 0x2e4   : > { %v1879_v57 = vmax.f32 %v1819_v22, 0.0  ;;  %v1895_v24 = vpack.c.bf16 %v1881_v28, %v1880_v1 }
 0x2e6   : > { %v1894_v62 = vpack.c.bf16 %v1879_v57, %v1878_v59 }
 0x2e8   : > { %2823 = vmatprep.mubr.bf16.mxu1 %v1894_v62 }
 0x2e9   : > { %2824 = vmatmul.mubr.bf16.vlgmr.msra.gmra.mxu1 %v1895_v24 }
 0x2eb   : > { %v2797_v27 = vpop.f32.mrf.mxu0 }
 0x2ec   : > { %v1840_v30 = vadd.f32 %v2797_v27, %v2452_v48 }
 0x2ed   : > { %v1831_v12 = vpop.f32.mrf.mxu0 }
 0x2ee   : > { %v1832_v60 = vadd.f32 %v2452_v48, %v1831_v12  ;;  %v1884_v35 = vmax.f32 %v1840_v30, 0.0 }
 0x2ef   : > { %v2798_v29 = vpop.f32.mrf.mxu0 }
 0x2f0   : > { %v1843_v25 = vadd.f32 %v2798_v29, %v2452_v48  ;;  %v1882_v31 = vmax.f32 %v1832_v60, 0.0 }
 0x2f1   : > { %v1834_v38 = vpop.f32.mrf.mxu0 }
 0x2f2   : > { %v1835_v2 = vadd.f32 %v2452_v48, %v1834_v38  ;;  %v1885_v6 = vmax.f32 %v1843_v25, 0.0 }
 0x2f4   : > { %v1883_v3 = vmax.f32 %v1835_v2, 0.0  ;;  %v1897_v9 = vpack.c.bf16 %v1885_v6, %v1884_v35 }
 0x2f6   : > { %v1896_v4 = vpack.c.bf16 %v1883_v3, %v1882_v31 }
 0x2f8   : > { %2827 = vmatprep.mubr.bf16.mxu1 %v1896_v4 }
 0x2f9   : > { %2828 = vmatmul.mubr.bf16.gmra.mxu1 %v1897_v9 }
 0x2fb   : > { %v2801_v41 = vpop.f32.mrf.mxu0 }
 0x2fc   : > { %v1856_v34 = vadd.f32 %v2801_v41, %v2452_v48 }
 0x2fd   : > { %v1847_v45 = vpop.f32.mrf.mxu0 }
 0x2fe   : > { %v1848_v19 = vadd.f32 %v2452_v48, %v1847_v45  ;;  %v1888_v20 = vmax.f32 %v1856_v34, 0.0 }
 0x2ff   : > { %v2802_v14 = vpop.f32.mrf.mxu0 }
 0x300   : > { %v1859_v51 = vadd.f32 %v2802_v14, %v2452_v48  ;;  %v1886_v63 = vmax.f32 %v1848_v19, 0.0 }
 0x301   : > { %v1850_v53 = vpop.f32.mrf.mxu0 }
 0x302   : > { %v1851_v55 = vadd.f32 %v2452_v48, %v1850_v53  ;;  %v1889_v56 = vmax.f32 %v1859_v51, 0.0 }
 0x304   : > { %v1887_v36 = vmax.f32 %v1851_v55, 0.0  ;;  %v1899_v39 = vpack.c.bf16 %v1889_v56, %v1888_v20 }
 0x306   : > { %v1898_v26 = vpack.c.bf16 %v1887_v36, %v1886_v63 }
 0x308   : > { %2831 = vmatprep.mubr.bf16.mxu1 %v1898_v26 }
 0x309   : > { %2832 = vmatmul.mubr.bf16.gmra.mxu1 %v1899_v39 }
 0x30b   : > { %v2805_v0 = vpop.f32.mrf.mxu0 }
 0x30c   : > { %v1872_v5 = vadd.f32 %v2805_v0, %v2452_v48 }
 0x30d   : > { %v1863_v37 = vpop.f32.mrf.mxu0 }
 0x30e   : > { %v1864_v10 = vadd.f32 %v2452_v48, %v1863_v37  ;;  %v1892_v47 = vmax.f32 %v1872_v5, 0.0 }
 0x30f   : > { %v2806_v21 = vpop.f32.mrf.mxu0 }
 0x310   : > { %v1875_v13 = vadd.f32 %v2806_v21, %v2452_v48  ;;  %v1890_v54 = vmax.f32 %v1864_v10, 0.0 }
 0x311   : > { %v1866_v32 = vpop.f32.mrf.mxu0 }
 0x312   : > { %v1867_v40 = vadd.f32 %v2452_v48, %v1866_v32  ;;  %v1893_v11 = vmax.f32 %v1875_v13, 0.0 }
 0x314   : > { %v1891_v43 = vmax.f32 %v1867_v40, 0.0  ;;  %v1901_v33 = vpack.c.bf16 %v1893_v11, %v1892_v47 }
 0x316   : > { %v1900_v58 = vpack.c.bf16 %v1891_v43, %v1890_v54 }
 0x318   : > { %2835 = vmatprep.mubr.bf16.mxu1 %v1900_v58 }
 0x319   : > { %2836 = vmatmul.mubr.bf16.gmra.mxu1 %v1901_v33 }
 0x3a9   : > { %v2825_v50 = vpop.f32.mrf.mxu1 }
 0x3aa   : > { %v2016_v15 = vadd.f32 %v2825_v50, %v2461_v8 }
 0x3ab   : > { %v2007_v42 = vpop.f32.mrf.mxu1 }
 0x3ac   : > { %v2008_v44 = vadd.f32 %v2461_v8, %v2007_v42  ;;  %2074 = vmax.xlane.f32.xlu1 %v2016_v15 }
 0x3ad   : > { %v2826_v46 = vpop.f32.mrf.mxu1 }
 0x3ae   : > { %v2019_v18 = vadd.f32 %v2826_v46, %v2461_v8  ;;  %2070 = vmax.xlane.f32.xlu0 %v2008_v44 }
 0x3af   : > { %v2010_v23 = vpop.f32.mrf.mxu1 }
 0x3b0   : > { %v2011_v16 = vadd.f32 %v2461_v8, %v2010_v23  ;;  %2076 = vmax.xlane.f32.xlu1 %v2019_v18 }
 0x3b2   : > { %2072 = vmax.xlane.f32.xlu0 %v2011_v16 }
 0x3b9   : > { %v2829_v48 = vpop.f32.mrf.mxu1 }
 0x3ba   : > { %v2032_v52 = vadd.f32 %v2829_v48, %v2461_v8 }
 0x3bb   : > { %v2023_v7 = vpop.f32.mrf.mxu1 }
 0x3bc   : > { %2082 = vmax.xlane.f32.xlu0 %v2032_v52  ;;  %v2024_v17 = vadd.f32 %v2461_v8, %v2023_v7 }
 0x3bd   : > { %v2830_v61 = vpop.f32.mrf.mxu1 }
 0x3be   : > { %v2035_v49 = vadd.f32 %v2830_v61, %v2461_v8 }
 0x3bf   : > { %v2026_v22 = vpop.f32.mrf.mxu1 }
 0x3c0   : > { %2084 = vmax.xlane.f32.xlu1 %v2035_v49  ;;  %2078 = vmax.xlane.f32.xlu0 %v2024_v17  ;;  %v2027_v28 = vadd.f32 %v2461_v8, %v2026_v22 }
 0x3c4   : > { %2080 = vmax.xlane.f32.xlu1 %v2027_v28 }
 0x3c9   : > { %v2833_v59 = vpop.f32.mrf.mxu1 }
 0x3ca   : > { %v3700_v57 = vadd.f32 %v2833_v59, %v2461_v8 }
 0x3cb   : > { %v2039_v1 = vpop.f32.mrf.mxu1 }
 0x3cc   : > { %2090 = vmax.xlane.f32.xlu0 %v3700_v57  ;;  %v3703_v24 = vadd.f32 %v2461_v8, %v2039_v1 }
 0x3cd   : > { %v2834_v62 = vpop.f32.mrf.mxu1 }
 0x3ce   : > { %v3705_v27 = vadd.f32 %v2834_v62, %v2461_v8 }
 0x3cf   : > { %v2042_v12 = vpop.f32.mrf.mxu1 }
 0x3d0   : > { %2092 = vmax.xlane.f32.xlu1 %v3705_v27  ;;  %2086 = vmax.xlane.f32.xlu0 %v3703_v24  ;;  %v3709_v29 = vadd.f32 %v2461_v8, %v2042_v12 }
 0x3d4   : > { %2088 = vmax.xlane.f32.xlu1 %v3709_v29 }
 0x3d9   : > { %v2837_v60 = vpop.f32.mrf.mxu1 }
 0x3da   : > { %v3715_v6 = vadd.f32 %v2837_v60, %v2461_v8 }
 0x3db   : > { %v2055_v25 = vpop.f32.mrf.mxu1 }
 0x3dc   : > { %v3712_v30 = vadd.f32 %v2461_v8, %v2055_v25 }
 0x3dd   : > { %v2838_v38 = vpop.f32.mrf.mxu1 }
 0x3de   : > { %2094 = vmax.xlane.f32.xlu0 %v3712_v30  ;;  %v3721_v3 = vadd.f32 %v2838_v38, %v2461_v8 }
 0x3df   : > { %v2058_v2 = vpop.f32.mrf.mxu1 }
 0x3e0   : > { %v3717_v31 = vadd.f32 %v2461_v8, %v2058_v2 }
 0x3e2   : > { %2096 = vmax.xlane.f32.xlu1 %v3717_v31  ;;  %2098 = vmax.xlane.f32.xlu0 %v3715_v6 }
 0x3e6   : > { %2100 = vmax.xlane.f32.xlu1 %v3721_v3 }
 0x435   : > { %v2075_v35 = vpop.xlane.xlu1 %2074 }
 0x436   : > { %v3724_v4 = vsub.f32 %v2016_v15, %v2075_v35 }
 0x437   : > { %v2071_v9 = vpop.xlane.xlu0 %2070 }
 0x438   : > { %v2122_v41 = vmul.f32 1.442695, %v3724_v4  ;;  %v3727_v45 = vsub.f32 %v2008_v44, %v2071_v9 }
 0x439   : > { %v2077_v14 = vpop.xlane.xlu1 %2076 }
 0x43a   : > { %3034 = vpow2.f32 %v2122_v41  ;;  %v2118_v19 = vmul.f32 1.442695, %v3727_v45  ;;  %v3730_v51 = vsub.f32 %v2019_v18, %v2077_v14 }
 0x43b   : > { %v2073_v34 = vpop.xlane.xlu0 %2072 }
 0x43c   : > { %v2124_v53 = vmul.f32 1.442695, %v3730_v51  ;;  %v3733_v55 = vsub.f32 %v2011_v16, %v2073_v34  ;;  %3036 = vpow2.f32 %v2118_v19 }
 0x43e   : > { %3038 = vpow2.f32 %v2124_v53  ;;  %v2120_v56 = vmul.f32 1.442695, %v3733_v55 }
 0x440   : > { %3040 = vpow2.f32 %v2120_v56 }
 0x445   : > { %v2083_v63 = vpop.xlane.xlu0 %2082 }
 0x446   : > { %v3736_v36 = vsub.f32 %v2032_v52, %v2083_v63 }
 0x447   : > { %v3035_v20 = vpop.eup %3034 }
 0x448   : > { %v2130_v26 = vmul.f32 1.442695, %v3736_v36  ;;  %2154 = vadd.xlane.f32.xlu0 %v3035_v20 }
 0x449   : > { %v2085_v39 = vpop.xlane.xlu1 %2084  ;;  %v2079_v0 = vpop.xlane.xlu0 %2078 }
 0x44a   : > { %v3037_v37 = vpop.eup %3036  ;;  %3042 = vpow2.f32 %v2130_v26  ;;  %v3739_v21 = vsub.f32 %v2035_v49, %v2085_v39  ;;  %v3741_v10 = vsub.f32 %v2024_v17, %v2079_v0 }
 0x44b   : > { %v3039_v13 = vpop.eup %3038 }
 0x44c   : > { %v2132_v5 = vmul.f32 1.442695, %v3739_v21  ;;  %v2126_v32 = vmul.f32 1.442695, %v3741_v10  ;;  %2156 = vadd.xlane.f32.xlu1 %v3039_v13  ;;  %2150 = vadd.xlane.f32.xlu0 %v3037_v37 }
 0x44d   : > { %v2081_v40 = vpop.xlane.xlu1 %2080  ;;  %v3041_v54 = vpop.eup %3040 }
 0x44e   : > { %3044 = vpow2.f32 %v2132_v5  ;;  %v3745_v11 = vsub.f32 %v2027_v28, %v2081_v40 }
 0x44f   : > { %3046 = vpow2.f32 %v2126_v32 }
 0x450   : > { %v2128_v43 = vmul.f32 1.442695, %v3745_v11  ;;  %2152 = vadd.xlane.f32.xlu1 %v3041_v54 }
 0x452   : > { %3048 = vpow2.f32 %v2128_v43 }
 0x455   : > { %v2091_v47 = vpop.xlane.xlu0 %2090 }
 0x456   : > { %v3749_v58 = vsub.f32 %v3700_v57, %v2091_v47 }
 0x457   : > { %v3043_v33 = vpop.eup %3042 }
 0x458   : > { %v2138_v8 = vmul.f32 1.442695, %v3749_v58  ;;  %2162 = vadd.xlane.f32.xlu0 %v3043_v33 }
 0x459   : > { %v2093_v50 = vpop.xlane.xlu1 %2092  ;;  %v2087_v15 = vpop.xlane.xlu0 %2086 }
 0x45a   : > { %3050 = vpow2.f32 %v2138_v8  ;;  %v3753_v42 = vsub.f32 %v3705_v27, %v2093_v50  ;;  %v3756_v44 = vsub.f32 %v3703_v24, %v2087_v15 }
 0x45b   : > { %v3045_v46 = vpop.eup %3044 }
 0x45c   : > { %v3047_v18 = vpop.eup %3046  ;;  %v2140_v23 = vmul.f32 1.442695, %v3753_v42  ;;  %v2134_v16 = vmul.f32 1.442695, %v3756_v44  ;;  %2164 = vadd.xlane.f32.xlu1 %v3045_v46 }
 0x45d   : > { %2158 = vadd.xlane.f32.xlu0 %v3047_v18  ;;  %v2089_v48 = vpop.xlane.xlu1 %2088 }
 0x45e   : > { %3052 = vpow2.f32 %v2140_v23  ;;  %v3761_v52 = vsub.f32 %v3709_v29, %v2089_v48 }
 0x45f   : > { %v3049_v7 = vpop.eup %3048  ;;  %3054 = vpow2.f32 %v2134_v16 }
 0x460   : > { %v2136_v61 = vmul.f32 1.442695, %v3761_v52  ;;  %2160 = vadd.xlane.f32.xlu1 %v3049_v7 }
 0x462   : > { %3056 = vpow2.f32 %v2136_v61 }
 0x467   : > { %v3051_v17 = vpop.eup %3050  ;;  %v2095_v49 = vpop.xlane.xlu0 %2094 }
 0x468   : > { %v3765_v22 = vsub.f32 %v3712_v30, %v2095_v49  ;;  %2170 = vadd.xlane.f32.xlu0 %v3051_v17 }
 0x46a   : > { %v2142_v28 = vmul.f32 1.442695, %v3765_v22 }
 0x46b   : > { %v3053_v59 = vpop.eup %3052  ;;  %v2097_v57 = vpop.xlane.xlu1 %2096 }
 0x46c   : > { %v2099_v1 = vpop.xlane.xlu0 %2098  ;;  %v3055_v62 = vpop.eup %3054  ;;  %3058 = vpow2.f32 %v2142_v28  ;;  %v3769_v24 = vsub.f32 %v3717_v31, %v2097_v57  ;;  %2172 = vadd.xlane.f32.xlu1 %v3053_v59 }
 0x46d   : > { %v3772_v27 = vsub.f32 %v3715_v6, %v2099_v1  ;;  %2166 = vadd.xlane.f32.xlu0 %v3055_v62 }
 0x46e   : > { %v2144_v12 = vmul.f32 1.442695, %v3769_v24 }
 0x46f   : > { %v2146_v29 = vmul.f32 1.442695, %v3772_v27  ;;  %v3057_v60 = vpop.eup %3056  ;;  %v2101_v25 = vpop.xlane.xlu1 %2100 }
 0x470   : > { %3060 = vpow2.f32 %v2144_v12  ;;  %v3777_v30 = vsub.f32 %v3721_v3, %v2101_v25  ;;  %2168 = vadd.xlane.f32.xlu1 %v3057_v60 }
 0x471   : > { %3062 = vpow2.f32 %v2146_v29 }
 0x472   : > { %v2148_v38 = vmul.f32 1.442695, %v3777_v30 }
 0x474   : > { %3064 = vpow2.f32 %v2148_v38 }
 0x479   : > { %v3059_v2 = vpop.eup %3058 }
 0x47a   : > { %2174 = vadd.xlane.f32.xlu0 %v3059_v2 }
 0x47d   : > { %v3061_v6 = vpop.eup %3060 }
 0x47e   : > { %v3063_v31 = vpop.eup %3062  ;;  %2176 = vadd.xlane.f32.xlu1 %v3061_v6 }
 0x47f   : > { %2178 = vadd.xlane.f32.xlu0 %v3063_v31 }
 0x481   : > { %v3065_v35 = vpop.eup %3064 }
 0x482   : > { %2180 = vadd.xlane.f32.xlu1 %v3065_v35 }
 0x4d1   : > { %v2155_v9 = vpop.xlane.xlu0 %2154 }
 0x4d2   : > { %3066 = vlog2.f32 %v2155_v9 }
 0x4d5   : > { %v2157_v41 = vpop.xlane.xlu1 %2156  ;;  %v2151_v3 = vpop.xlane.xlu0 %2150 }
 0x4d6   : > { %3068 = vlog2.f32 %v2157_v41 }
 0x4d7   : > { %3070 = vlog2.f32 %v2151_v3 }
 0x4d9   : > { %v2153_v14 = vpop.xlane.xlu1 %2152 }
 0x4da   : > { %3072 = vlog2.f32 %v2153_v14 }
 0x4df   : > { %v3067_v19 = vpop.eup %3066 }
 0x4e0   : > { %v2187_v34 = vmul.f32 0.6931472, %v3067_v19 }
 0x4e1   : > { %v2163_v53 = vpop.xlane.xlu0 %2162 }
 0x4e2   : > { %v2216_v56 = vsub.f32 %v3724_v4, %v2187_v34  ;;  %3074 = vlog2.f32 %v2163_v53 }
 0x4e3   : > { %v3069_v63 = vpop.eup %3068 }
 0x4e4   : > { %v3071_v20 = vpop.eup %3070  ;;  %2232 = vst [vmem:[%s3784_s16 + $0x10] sm:$0xff] %v2216_v56  ;;  %v2189_v26 = vmul.f32 0.6931472, %v3069_v63 }
 0x4e5   : > { %v2183_v39 = vmul.f32 0.6931472, %v3071_v20  ;;  %v2165_v0 = vpop.xlane.xlu1 %2164 }
 0x4e6   : > { %v2217_v37 = vsub.f32 %v3730_v51, %v2189_v26  ;;  %3076 = vlog2.f32 %v2165_v0  ;;  %v2159_v13 = vpop.xlane.xlu0 %2158 }
 0x4e7   : > { %v3073_v5 = vpop.eup %3072  ;;  %v2214_v4 = vsub.f32 %v3727_v45, %v2183_v39  ;;  %3078 = vlog2.f32 %v2159_v13 }
 0x4e8   : > { %2233 = vst [vmem:[%s3784_s16 + $0x18] sm:$0xff] %v2217_v37  ;;  %v2185_v32 = vmul.f32 0.6931472, %v3073_v5 }
 0x4e9   : > { %2230 = vst [vmem:[%s3784_s16] sm:$0xff] %v2214_v4  ;;  %v2161_v40 = vpop.xlane.xlu1 %2160 }
 0x4ea   : > { %v2215_v54 = vsub.f32 %v3733_v55, %v2185_v32  ;;  %3080 = vlog2.f32 %v2161_v40 }
 0x4ec   : > { %2231 = vst [vmem:[%s3784_s16 + $0x8] sm:$0xff] %v2215_v54 }
 0x4ef   : > { %v3075_v43 = vpop.eup %3074 }
 0x4f0   : > { %v2195_v47 = vmul.f32 0.6931472, %v3075_v43 }
 0x4f1   : > { %v2171_v33 = vpop.xlane.xlu0 %2170 }
 0x4f2   : > { %v2220_v51 = vsub.f32 %v3736_v36, %v2195_v47  ;;  %3082 = vlog2.f32 %v2171_v33 }
 0x4f3   : > { %v3077_v8 = vpop.eup %3076 }
 0x4f4   : > { %v3079_v45 = vpop.eup %3078  ;;  %2236 = vst [vmem:[%s3784_s16 + $0x30] sm:$0xff] %v2220_v51  ;;  %v2197_v50 = vmul.f32 0.6931472, %v3077_v8 }
 0x4f5   : > { %v2191_v15 = vmul.f32 0.6931472, %v3079_v45  ;;  %v2173_v46 = vpop.xlane.xlu1 %2172 }
 0x4f6   : > { %v2221_v18 = vsub.f32 %v3739_v21, %v2197_v50  ;;  %3084 = vlog2.f32 %v2173_v46  ;;  %v2167_v55 = vpop.xlane.xlu0 %2166 }
 0x4f7   : > { %v3081_v23 = vpop.eup %3080  ;;  %v2218_v16 = vsub.f32 %v3741_v10, %v2191_v15  ;;  %3086 = vlog2.f32 %v2167_v55 }
 0x4f8   : > { %2237 = vst [vmem:[%s3784_s16 + $0x38] sm:$0xff] %v2221_v18  ;;  %v2193_v36 = vmul.f32 0.6931472, %v3081_v23 }
 0x4f9   : > { %2234 = vst [vmem:[%s3784_s16 + $0x20] sm:$0xff] %v2218_v16  ;;  %v2169_v48 = vpop.xlane.xlu1 %2168 }
 0x4fa   : > { %v2219_v7 = vsub.f32 %v3745_v11, %v2193_v36  ;;  %3088 = vlog2.f32 %v2169_v48 }
 0x4fc   : > { %2235 = vst [vmem:[%s3784_s16 + $0x28] sm:$0xff] %v2219_v7 }
 0x4ff   : > { %v3083_v61 = vpop.eup %3082 }
 0x500   : > { %v2203_v17 = vmul.f32 0.6931472, %v3083_v61 }
 0x502   : > { %v2224_v21 = vsub.f32 %v3749_v58, %v2203_v17 }
 0x503   : > { %v3085_v49 = vpop.eup %3084  ;;  %v2175_v28 = vpop.xlane.xlu0 %2174 }
 0x504   : > { %v3087_v59 = vpop.eup %3086  ;;  %2240 = vst [vmem:[%s3784_s16 + $0x50] sm:$0xff] %v2224_v21  ;;  %v2205_v10 = vmul.f32 0.6931472, %v3085_v49  ;;  %3090 = vlog2.f32 %v2175_v28 }
 0x505   : > { %v2199_v57 = vmul.f32 0.6931472, %v3087_v59 }
 0x506   : > { %v2225_v1 = vsub.f32 %v3753_v42, %v2205_v10 }
 0x507   : > { %v3089_v62 = vpop.eup %3088  ;;  %v2222_v11 = vsub.f32 %v3756_v44, %v2199_v57  ;;  %v2177_v12 = vpop.xlane.xlu1 %2176 }
 0x508   : > { %2241 = vst [vmem:[%s3784_s16 + $0x58] sm:$0xff] %v2225_v1  ;;  %v2201_v29 = vmul.f32 0.6931472, %v3089_v62  ;;  %3092 = vlog2.f32 %v2177_v12  ;;  %v2179_v58 = vpop.xlane.xlu0 %2178 }
 0x509   : > { %2238 = vst [vmem:[%s3784_s16 + $0x40] sm:$0xff] %v2222_v11  ;;  %3094 = vlog2.f32 %v2179_v58 }
 0x50a   : > { %v2223_v60 = vsub.f32 %v3761_v52, %v2201_v29 }
 0x50b   : > { %v2181_v25 = vpop.xlane.xlu1 %2180 }
 0x50c   : > { %2239 = vst [vmem:[%s3784_s16 + $0x48] sm:$0xff] %v2223_v60  ;;  %3096 = vlog2.f32 %v2181_v25 }
 0x511   : > { %v3091_v42 = vpop.eup %3090 }
 0x512   : > { %v2207_v38 = vmul.f32 0.6931472, %v3091_v42 }
 0x514   : > { %v2226_v44 = vsub.f32 %v3765_v22, %v2207_v38 }
 0x515   : > { %v3093_v2 = vpop.eup %3092 }
 0x516   : > { %v3095_v6 = vpop.eup %3094  ;;  %2242 = vst [vmem:[%s3784_s16 + $0x60] sm:$0xff] %v2226_v44  ;;  %v2209_v31 = vmul.f32 0.6931472, %v3093_v2 }
 0x517   : > { %v2211_v35 = vmul.f32 0.6931472, %v3095_v6 }
 0x518   : > { %v2227_v9 = vsub.f32 %v3769_v24, %v2209_v31 }
 0x519   : > { %v3097_v52 = vpop.eup %3096  ;;  %v2228_v41 = vsub.f32 %v3772_v27, %v2211_v35 }
 0x51a   : > { %2243 = vst [vmem:[%s3784_s16 + $0x68] sm:$0xff] %v2227_v9  ;;  %v2213_v3 = vmul.f32 0.6931472, %v3097_v52 }
 0x51b   : > { %2244 = vst [vmem:[%s3784_s16 + $0x70] sm:$0xff] %v2228_v41 }
 0x51c   : > { %v2229_v22 = vsub.f32 %v3777_v30, %v2213_v3 }
 0x51e   : > { %2245 = vst [vmem:[%s3784_s16 + $0x78] sm:$0xff] %v2229_v22 }
 0x51f   : > { %3111 = shalt.err (!%p3108_p3)
}
 0x520   : > { %s3112_s14 = scalar_lea.hbm %s3820_s23, 2048  ;;  %s3116_s17 = scalar_lea.hbm %s3877_s9, 4096 }
 0x521   : > { %p3113_p4 = scmp.ne.s32.totalorder %s3820_s23, %s3112_s14  ;;  %p3117_p9 = scmp.lt.s32.totalorder %s3820_s23, %s3877_s9 }
 0x522   : > { %p3118_p10 = scmp.lt.s32.totalorder %s3116_s17, %s3112_s14 }
 0x523   : > { %p3114_p7 = pnand %p3113_p4, %p3251_p5 }
 0x524   : > { %p3119_p11 = por %p3118_p10, %p3117_p9 }
 0x525   : > { %p3115_p8 = pneg %p3114_p7 }
 0x527   : > { %p3120_p12 = pnand %p3119_p11, %p3115_p8 }
 0x529   : > { %3123 = shalt.err (!%p3120_p12)
}
 0x52a   : > { %s3161_s27 = smov 128   ;;  %s3162_s28 = smov 8  }
 0x52b   : > { %2840 = dma.vmem_to_hbm [thread:$0]  (%p3251_p5), %s3822_s21, 2048, %s3820_s23, %s3828_s13, %s3161_s27, %s3161_s27, %s3162_s28  }
 0x52c PF: > { %p2846_p13 = scmp.ge.s32.totalorder %s3158_s12, 2  ;;  %s2275_s24 = sand.u32 1, %s3146_s30  }
 0x52d   : > { %s2276_s29 = scalar_lea.sflag [#allocation3], %s2275_s24 }
 0x52e   : > { %p2843_p0 = pnand %p2846_p13, %p3255_p6 }
 0x530   : > { %p2844_p1 = pneg %p2843_p0 }
 0x532   : > { %3141 = dma.done.wait (%p2844_p1), %s2276_s29, 2048  }
 0x533   : > { %3143 = vsyncadd (%p2844_p1), %s2276_s29, 4294965248  ;;  %p19_p2 = scmp.ge.s32.totalorder %s3238_s15, 4   ;;  %s3880_s30 = smov %s3150_s10 }
 0x534   : > { %s3881_s10 = smov %s3154_s11  ;;  %s3882_s11 = smov %s3249_s18 }
 0x535   : > { %s3883_s12 = smov %s3238_s15  ;;  %21 = sbr.rel (!%p19_p2) target bundleno = 3 (0x3), region = 91 }
 0x53a   :  { %2281 = vsyncpa [#allocation3], 1 }
 0x53b   :  { %2283 = vsyncpa [#allocation3 + $0x1], 1 }

</bundles_post_ra>
